<compile_context>
chip_gen: v7x
topology: tpu7x:2x2x1
jax: 0.10.0
libtpu: 0.0.40
codegen_flags: <defaults>
</compile_context>

<pallas_src>
import math

import jax
import jax.numpy as jnp
import numpy as np
from jax import lax
from jax.experimental import pallas as pl
from jax.experimental.pallas import tpu as pltpu


# --------------------------------------------------------------------------
# Fused kernel.  Grid = (B, F): one batch element x one frame per step.
# Working layout is (C, L): channels on sublanes, L = H*W on lanes.
# --------------------------------------------------------------------------
def _make_kernel(num_frames: int, embed_dim: int, seq_len: int, s_tile: int,
                 mxu_dtype=jnp.bfloat16):
    nf, nc, L, ts = num_frames, embed_dim, seq_len, s_tile
    n_chunks = L // ts

    def kernel(st_ref, res_ref, wt_ref, bt_ref, wq_ref, bq_ref,
               wkv_ref, bkv_ref, wo_ref, bo_ref,
               o_ref,
               comp_ref, oacc_ref, m_ref, l_ref, acc_ref):
        f = pl.program_id(1)
        mx = lambda x: x.astype(mxu_dtype)        # MXU operand dtype (f32 elementwise math)

        # ---- frame 0: temporal compression + output-accumulator init ----------------
        @pl.when(f == 0)
        def _():
            comp = bt_ref[...]                                   # (C, 1) lane-broadcast
            for fr in range(nf):                                 # small F, VPU only
                comp = comp + st_ref[fr] * wt_ref[fr]            # (C, L) * (C, 1)
            comp_ref[...] = comp
            oacc_ref[...] = comp + bo_ref[...]                   # residual + summed out biases

        # ---- Q projection for this frame (1/sqrt(C) folded into wq/bq): (C, L) ------
        q = jnp.dot(wq_ref[...], mx(comp_ref[...]),
                    preferred_element_type=jnp.float32) + bq_ref[...]
        q_mx = mx(q)

        # ---- online-softmax (flash) loop over S tiles --------------------------------
        m_ref[...] = jnp.full_like(m_ref, -jnp.inf)
        l_ref[...] = jnp.zeros_like(l_ref)
        acc_ref[...] = jnp.zeros_like(acc_ref)

        def s_step(j, carry):
            s0 = pl.multiple_of(j * ts, ts)
            res_c = res_ref[:, pl.ds(s0, ts)]                    # (C, TS) lane slice
            kv = jnp.dot(wkv_ref[...], mx(res_c),
                         preferred_element_type=jnp.float32) + bkv_ref[...]   # (2C, TS)
            k = mx(kv[:nc, :])                                   # (C, TS)
            v = mx(kv[nc:, :])                                   # (C, TS)

            # Scores kept in (S, L) orientation so the probability matrix is never a
            # transposed MXU operand; only the tiny (C, TS) K tile may be transposed.
            s = lax.dot_general(k, q_mx, (((0,), (0,)), ((), ())),
                                preferred_element_type=jnp.float32)           # (TS, L)
            m_prev = m_ref[...]
            m_new = jnp.maximum(m_prev, jnp.max(s, axis=0, keepdims=True))    # (1, L)
            alpha = jnp.exp(m_prev - m_new)                                   # f32
            p = jnp.exp(s - m_new)                                            # f32
            l_ref[...] = alpha * l_ref[...] + jnp.sum(p, axis=0, keepdims=True)
            acc_ref[...] = alpha * acc_ref[...] + jnp.dot(
                v, mx(p), preferred_element_type=jnp.float32)                 # (C, L), NN
            m_ref[...] = m_new
            return carry

        lax.fori_loop(0, n_chunks, s_step, 0)

        # ---- normalize, out-project this frame, accumulate (reduce='sum') -----------
        attn = acc_ref[...] * pl.reciprocal(l_ref[...], approx=True)          # (C, L)
        oacc_ref[...] += jnp.dot(wo_ref[...], mx(attn),
                                 preferred_element_type=jnp.float32)

        @pl.when(f == nf - 1)
        def _():
            o_ref[...] = oacc_ref[...]

    return kernel


# --------------------------------------------------------------------------
# One-time host/XLA-side rearrangement of PyTorch-layout parameters.
# --------------------------------------------------------------------------
def _prepare_params(params, num_frames, embed_dim, mxu_dtype):
    F, C = num_frames, embed_dim
    scale = 1.0 / math.sqrt(C)                        # num_heads == 1 -> head_dim == C
    w_in, b_in = params["w_in"], params["b_in"]       # (F, 3C, C), (F, 3C)
    return {
        "wt": params["wt"][:, :, None].astype(jnp.float32),             # (F, C, 1)
        "bt": params["bt"][:, None].astype(jnp.float32),                # (C, 1)
        "wq": (w_in[:, :C, :] * scale).astype(mxu_dtype),               # (F, C, C)
        "bq": (b_in[:, :C] * scale)[..., None].astype(jnp.float32),     # (F, C, 1)
        "wkv": w_in[:, C:, :].astype(mxu_dtype),                        # (F, 2C, C)  [K;V]
        "bkv": b_in[:, C:][..., None].astype(jnp.float32),              # (F, 2C, 1)
        "wo": params["w_out"].astype(mxu_dtype),                        # (F, C, C)
        "bo": jnp.sum(params["b_out"], axis=0)[:, None].astype(jnp.float32),  # (C, 1)
    }


# --------------------------------------------------------------------------
# Wrapper
# --------------------------------------------------------------------------
def spatial_attention_block(st, res, params, mxu_dtype=jnp.bfloat16, s_tile=512):
    """st, res: (B, F, C, H, W) float32 -> (B, C, H, W).  reduce='sum', num_heads=1."""
    B, F, C, H, W = st.shape
    L = H * W
    ts = min(s_tile, L)
    assert L % ts == 0, "spatial length must be divisible by the S tile"

    st_l = st.reshape(B, F, C, L)        # free reshapes, NO transposes
    res_l = res.reshape(B, F, C, L)
    p = _prepare_params(params, F, C, mxu_dtype)

    def resident(a):                      # full array, resident across the whole grid
        nd = a.ndim
        return pl.BlockSpec(a.shape, lambda b, f: (0,) * nd)

    def per_frame(a):                     # one frame's weights streamed per grid step
        return pl.BlockSpec((None,) + a.shape[1:], lambda b, f: (f, 0, 0))

    # ---- advisory cost estimate + explicit VMEM budget --------------------------------
    flops = 2 * B * F * (C * C * L          # Q proj
                         + 2 * C * C * L    # fused K/V proj
                         + C * L * L        # scores
                         + C * L * L        # P @ V
                         + C * C * L)       # out proj
    transcendentals = B * F * (L * L + 2 * L)
    param_bytes = sum(int(np.prod(v.shape)) * v.dtype.itemsize for v in p.values())
    bytes_accessed = (st_l.size + res_l.size + B * C * L) * 4 + param_bytes

    vmem_need = (F * C * L * 4 * 2          # st block (double buffered)
                 + C * L * 4 * 2 * 2        # res + out blocks (double buffered)
                 + 3 * C * L * 4            # comp / oacc / acc scratch
                 + 2 * 8 * L * 4            # m / l scratch (sublane-padded)
                 + 4 * ts * L * 4           # score/prob tile + temporaries
                 + 2 * 2 * C * ts * 4
                 + 2 * param_bytes)
    vmem_limit = int(min(max(2 * vmem_need, 32 * 1024 * 1024), 64 * 1024 * 1024))

    out = pl.pallas_call(
        _make_kernel(F, C, L, ts, mxu_dtype),
        out_shape=jax.ShapeDtypeStruct((B, C, L), jnp.float32),
        grid_spec=pltpu.PrefetchScalarGridSpec(
            num_scalar_prefetch=0,
            grid=(B, F),
            in_specs=[
                pl.BlockSpec((None, F, C, L), lambda b, f: (b, 0, 0, 0)),     # st[b]
                pl.BlockSpec((None, None, C, L), lambda b, f: (b, f, 0, 0)),  # res[b, f]
                resident(p["wt"]), resident(p["bt"]),
                per_frame(p["wq"]), per_frame(p["bq"]),
                per_frame(p["wkv"]), per_frame(p["bkv"]),
                per_frame(p["wo"]), resident(p["bo"]),
            ],
            out_specs=pl.BlockSpec((None, C, L), lambda b, f: (b, 0, 0)),
            scratch_shapes=[
                pltpu.VMEM((C, L), jnp.float32),   # comp  (temporal-compression output)
                pltpu.VMEM((C, L), jnp.float32),   # oacc  (output accumulator, f32)
                pltpu.VMEM((1, L), jnp.float32),   # m     (running max)
                pltpu.VMEM((1, L), jnp.float32),   # l     (running denom)
                pltpu.VMEM((C, L), jnp.float32),   # acc   (running unnormalized attn)
            ],
        ),
        compiler_params=pltpu.CompilerParams(
            dimension_semantics=("parallel", "arbitrary"),
            vmem_limit_bytes=vmem_limit,
        ),
        cost_estimate=pl.CostEstimate(
            flops=int(flops),
            transcendentals=int(transcendentals),
            bytes_accessed=int(bytes_accessed)),
    )(st_l, res_l, p["wt"], p["bt"], p["wq"], p["bq"],
      p["wkv"], p["bkv"], p["wo"], p["bo"])

    return out.reshape(B, C, H, W)


# --------------------------------------------------------------------------
# Pure-JAX reference (same math, PyTorch-layout weights, all f32) for validation
# --------------------------------------------------------------------------
def reference(st, res, params):
    B, F, C, H, W = st.shape
    L = H * W
    st_l = jnp.transpose(st.reshape(B, F, C, L), (0, 1, 3, 2))    # (B, F, L, C)
    res_l = jnp.transpose(res.reshape(B, F, C, L), (0, 1, 3, 2))

    compress = jnp.einsum("bflc,fc->blc", st_l, params["wt"]) + params["bt"]
    out = compress
    scale = 1.0 / math.sqrt(C)
    for f in range(F):
        w_in, b_in = params["w_in"][f], params["b_in"][f]
        wq, wk, wv = w_in[:C], w_in[C:2 * C], w_in[2 * C:]
        bq, bk, bv = b_in[:C], b_in[C:2 * C], b_in[2 * C:]
        Q = compress @ wq.T + bq
        K = res_l[:, f] @ wk.T + bk
        V = res_l[:, f] @ wv.T + bv
        s = jnp.einsum("blc,bsc->bls", Q, K) * scale
        p = jax.nn.softmax(s, axis=-1)
        a = jnp.einsum("bls,bsc->blc", p, V)
        out = out + a @ params["w_out"][f].T + params["b_out"][f]
    return jnp.transpose(out, (0, 2, 1)).reshape(B, C, H, W)


# --------------------------------------------------------------------------
# Deterministic parameter init (PyTorch-style layouts) + run
# --------------------------------------------------------------------------
def init_params(key, num_frames, embed_dim):
    F, C = num_frames, embed_dim
    ks = jax.random.split(key, 6)
    return {
        # temporal compression (stand-in for OneD conv): per-channel weights over frames
        "wt": 0.2 * jax.random.normal(ks[0], (F, C), jnp.float32),
        "bt": 0.1 * jax.random.normal(ks[1], (C,), jnp.float32),
        # per-frame MultiheadAttention parameters (kdim == vdim == embed_dim)
        "w_in": 0.2 * jax.random.normal(ks[2], (F, 3 * C, C), jnp.float32),
        "b_in": 0.1 * jax.random.normal(ks[3], (F, 3 * C), jnp.float32),
        "w_out": 0.2 * jax.random.normal(ks[4], (F, C, C), jnp.float32),
        "b_out": 0.1 * jax.random.normal(ks[5], (F, C), jnp.float32),
    }


if __name__ == "__main__":
    B, F, C, H, W = 2, 4, 8, 16, 16     # L = H*W = 256 -> lane-dense (2 x 128 lanes)

    key = jax.random.PRNGKey(0)
    k_st, k_res, k_par = jax.random.split(key, 3)
    st_embeddings = jax.random.normal(k_st, (B, F, C, H, W), jnp.float32)
    res_embeddings = jax.random.normal(k_res, (B, F, C, H, W), jnp.float32)
    params = init_params(k_par, F, C)

    fn = jax.jit(spatial_attention_block)
    out = jax.block_until_ready(fn(st_embeddings, res_embeddings, params))
    assert out.shape == (B, C, H, W)

    ref = jax.block_until_ready(reference(st_embeddings, res_embeddings, params))
    # tolerance accounts for bf16 MXU operands + pl.reciprocal(approx=True) denominator
    np.testing.assert_allclose(np.asarray(out), np.asarray(ref), rtol=3e-2, atol=3e-2)

    print("KERNEL_OK")
</pallas_src>

<mosaic_0001>
module attributes {stable_mosaic.version = 11 : i64} {
  func.func @kernel(%arg0: i32, %arg1: i32, %arg2: memref<1x4x8x256xf32, #tpu.memory_space<vmem>>, %arg3: memref<1x1x8x256xf32, #tpu.memory_space<vmem>>, %arg4: memref<4x8x1xf32, #tpu.memory_space<vmem>>, %arg5: memref<8x1xf32, #tpu.memory_space<vmem>>, %arg6: memref<1x8x8xbf16, #tpu.memory_space<vmem>>, %arg7: memref<1x8x1xf32, #tpu.memory_space<vmem>>, %arg8: memref<1x16x8xbf16, #tpu.memory_space<vmem>>, %arg9: memref<1x16x1xf32, #tpu.memory_space<vmem>>, %arg10: memref<1x8x8xbf16, #tpu.memory_space<vmem>>, %arg11: memref<8x1xf32, #tpu.memory_space<vmem>>, %arg12: memref<1x8x256xf32, #tpu.memory_space<vmem>>, %arg13: memref<8x256xf32, #tpu.memory_space<vmem>>, %arg14: memref<8x256xf32, #tpu.memory_space<vmem>>, %arg15: memref<1x256xf32, #tpu.memory_space<vmem>>, %arg16: memref<1x256xf32, #tpu.memory_space<vmem>>, %arg17: memref<8x256xf32, #tpu.memory_space<vmem>>) attributes {dimension_semantics = [#tpu.dimension_semantics<parallel>, #tpu.dimension_semantics<arbitrary>], iteration_bounds = array<i64: 2, 4>, scalar_prefetch = 0 : i64, scratch_operands = 5 : i64, tpu.core_type = #tpu.core_type<tc>, window_params = [{transform_indices = @transform_0, window_bounds = array<i64: 1, 4, 8, 256>}, {transform_indices = @transform_1, window_bounds = array<i64: 1, 1, 8, 256>}, {pipeline_mode = #tpu.pipeline_mode<synchronous>, transform_indices = @transform_2, window_bounds = array<i64: 4, 8, 1>}, {pipeline_mode = #tpu.pipeline_mode<synchronous>, transform_indices = @transform_3, window_bounds = array<i64: 8, 1>}, {transform_indices = @transform_4, window_bounds = array<i64: 1, 8, 8>}, {transform_indices = @transform_5, window_bounds = array<i64: 1, 8, 1>}, {transform_indices = @transform_6, window_bounds = array<i64: 1, 16, 8>}, {transform_indices = @transform_7, window_bounds = array<i64: 1, 16, 1>}, {transform_indices = @transform_8, window_bounds = array<i64: 1, 8, 8>}, {pipeline_mode = #tpu.pipeline_mode<synchronous>, transform_indices = @transform_9, window_bounds = array<i64: 8, 1>}, {transform_indices = @transform_10, window_bounds = array<i64: 1, 8, 256>}]} {
    %c0_i32 = arith.constant 0 : i32
    %0 = arith.cmpi eq, %arg1, %c0_i32 : i32
    %1 = arith.extui %0 : i1 to i32
    %c0_i32_0 = arith.constant 0 : i32
    %2 = arith.cmpi ne, %1, %c0_i32_0 : i32
    scf.if %2 {
      %c0_57 = arith.constant 0 : index
      %c0_58 = arith.constant 0 : index
      %75 = vector.load %arg5[%c0_57, %c0_58] : memref<8x1xf32, #tpu.memory_space<vmem>>, vector<8x1xf32>
      %c0_59 = arith.constant 0 : index
      %c0_60 = arith.constant 0 : index
      %c0_61 = arith.constant 0 : index
      %c0_62 = arith.constant 0 : index
      %76 = vector.load %arg2[%c0_59, %c0_60, %c0_61, %c0_62] : memref<1x4x8x256xf32, #tpu.memory_space<vmem>>, vector<1x1x8x256xf32>
      %77 = vector.shape_cast %76 : vector<1x1x8x256xf32> to vector<8x256xf32>
      %c0_63 = arith.constant 0 : index
      %c0_64 = arith.constant 0 : index
      %c0_65 = arith.constant 0 : index
      %78 = vector.load %arg4[%c0_63, %c0_64, %c0_65] : memref<4x8x1xf32, #tpu.memory_space<vmem>>, vector<1x8x1xf32>
      %79 = vector.shape_cast %78 : vector<1x8x1xf32> to vector<8x1xf32>
      %80 = vector.broadcast %79 : vector<8x1xf32> to vector<8x256xf32>
      %81 = arith.mulf %77, %80 : vector<8x256xf32>
      %82 = vector.broadcast %75 : vector<8x1xf32> to vector<8x256xf32>
      %83 = arith.addf %82, %81 : vector<8x256xf32>
      %c0_66 = arith.constant 0 : index
      %c1 = arith.constant 1 : index
      %c0_67 = arith.constant 0 : index
      %c0_68 = arith.constant 0 : index
      %84 = vector.load %arg2[%c0_66, %c1, %c0_67, %c0_68] : memref<1x4x8x256xf32, #tpu.memory_space<vmem>>, vector<1x1x8x256xf32>
      %85 = vector.shape_cast %84 : vector<1x1x8x256xf32> to vector<8x256xf32>
      %c1_69 = arith.constant 1 : index
      %c0_70 = arith.constant 0 : index
      %c0_71 = arith.constant 0 : index
      %86 = vector.load %arg4[%c1_69, %c0_70, %c0_71] : memref<4x8x1xf32, #tpu.memory_space<vmem>>, vector<1x8x1xf32>
      %87 = vector.shape_cast %86 : vector<1x8x1xf32> to vector<8x1xf32>
      %88 = vector.broadcast %87 : vector<8x1xf32> to vector<8x256xf32>
      %89 = arith.mulf %85, %88 : vector<8x256xf32>
      %90 = arith.addf %83, %89 : vector<8x256xf32>
      %c0_72 = arith.constant 0 : index
      %c2 = arith.constant 2 : index
      %c0_73 = arith.constant 0 : index
      %c0_74 = arith.constant 0 : index
      %91 = vector.load %arg2[%c0_72, %c2, %c0_73, %c0_74] : memref<1x4x8x256xf32, #tpu.memory_space<vmem>>, vector<1x1x8x256xf32>
      %92 = vector.shape_cast %91 : vector<1x1x8x256xf32> to vector<8x256xf32>
      %c2_75 = arith.constant 2 : index
      %c0_76 = arith.constant 0 : index
      %c0_77 = arith.constant 0 : index
      %93 = vector.load %arg4[%c2_75, %c0_76, %c0_77] : memref<4x8x1xf32, #tpu.memory_space<vmem>>, vector<1x8x1xf32>
      %94 = vector.shape_cast %93 : vector<1x8x1xf32> to vector<8x1xf32>
      %95 = vector.broadcast %94 : vector<8x1xf32> to vector<8x256xf32>
      %96 = arith.mulf %92, %95 : vector<8x256xf32>
      %97 = arith.addf %90, %96 : vector<8x256xf32>
      %c0_78 = arith.constant 0 : index
      %c3 = arith.constant 3 : index
      %c0_79 = arith.constant 0 : index
      %c0_80 = arith.constant 0 : index
      %98 = vector.load %arg2[%c0_78, %c3, %c0_79, %c0_80] : memref<1x4x8x256xf32, #tpu.memory_space<vmem>>, vector<1x1x8x256xf32>
      %99 = vector.shape_cast %98 : vector<1x1x8x256xf32> to vector<8x256xf32>
      %c3_81 = arith.constant 3 : index
      %c0_82 = arith.constant 0 : index
      %c0_83 = arith.constant 0 : index
      %100 = vector.load %arg4[%c3_81, %c0_82, %c0_83] : memref<4x8x1xf32, #tpu.memory_space<vmem>>, vector<1x8x1xf32>
      %101 = vector.shape_cast %100 : vector<1x8x1xf32> to vector<8x1xf32>
      %102 = vector.broadcast %101 : vector<8x1xf32> to vector<8x256xf32>
      %103 = arith.mulf %99, %102 : vector<8x256xf32>
      %104 = arith.addf %97, %103 : vector<8x256xf32>
      %c0_84 = arith.constant 0 : index
      %c0_85 = arith.constant 0 : index
      %105 = vector.load %arg13[%c0_84, %c0_85] : memref<8x256xf32, #tpu.memory_space<vmem>>, vector<8x256xf32>
      tpu.vector_store %arg13[%c0_84, %c0_85], %104 {strides = array<i32>} : memref<8x256xf32, #tpu.memory_space<vmem>>, vector<8x256xf32>,
      %c0_86 = arith.constant 0 : index
      %c0_87 = arith.constant 0 : index
      %106 = vector.load %arg11[%c0_86, %c0_87] : memref<8x1xf32, #tpu.memory_space<vmem>>, vector<8x1xf32>
      %107 = vector.broadcast %106 : vector<8x1xf32> to vector<8x256xf32>
      %108 = arith.addf %104, %107 : vector<8x256xf32>
      %c0_88 = arith.constant 0 : index
      %c0_89 = arith.constant 0 : index
      %109 = vector.load %arg14[%c0_88, %c0_89] : memref<8x256xf32, #tpu.memory_space<vmem>>, vector<8x256xf32>
      tpu.vector_store %arg14[%c0_88, %c0_89], %108 {strides = array<i32>} : memref<8x256xf32, #tpu.memory_space<vmem>>, vector<8x256xf32>,
    } else {
    }
    %c0 = arith.constant 0 : index
    %c0_1 = arith.constant 0 : index
    %c0_2 = arith.constant 0 : index
    %3 = vector.load %arg6[%c0, %c0_1, %c0_2] : memref<1x8x8xbf16, #tpu.memory_space<vmem>>, vector<1x8x8xbf16>
    %4 = vector.shape_cast %3 : vector<1x8x8xbf16> to vector<8x8xbf16>
    %c0_3 = arith.constant 0 : index
    %c0_4 = arith.constant 0 : index
    %5 = vector.load %arg13[%c0_3, %c0_4] : memref<8x256xf32, #tpu.memory_space<vmem>>, vector<8x256xf32>
    %6 = arith.truncf %5 : vector<8x256xf32> to vector<8x256xbf16>
    %cst = arith.constant dense<0.000000e+00> : vector<8x256xf32>
    %7 = tpu.matmul %4, %6, %cst {dimension_numbers = #tpu.dot_dimension_numbers<[1], [0], [0], [1], [0, 0, 1, 1], [], []>} : vector<8x8xbf16>, vector<8x256xbf16>, vector<8x256xf32> -> vector<8x256xf32>
    %c0_5 = arith.constant 0 : index
    %c0_6 = arith.constant 0 : index
    %c0_7 = arith.constant 0 : index
    %8 = vector.load %arg7[%c0_5, %c0_6, %c0_7] : memref<1x8x1xf32, #tpu.memory_space<vmem>>, vector<1x8x1xf32>
    %9 = vector.shape_cast %8 : vector<1x8x1xf32> to vector<8x1xf32>
    %10 = vector.broadcast %9 : vector<8x1xf32> to vector<8x256xf32>
    %11 = arith.addf %7, %10 : vector<8x256xf32>
    %12 = arith.truncf %11 : vector<8x256xf32> to vector<8x256xbf16>
    %cst_8 = arith.constant 0xFF800000 : f32
    %13 = vector.broadcast %cst_8 : f32 to vector<1x256xf32>
    %c0_9 = arith.constant 0 : index
    %c0_10 = arith.constant 0 : index
    %14 = vector.load %arg15[%c0_9, %c0_10] : memref<1x256xf32, #tpu.memory_space<vmem>>, vector<1x256xf32>
    tpu.vector_store %arg15[%c0_9, %c0_10], %13 {strides = array<i32>} : memref<1x256xf32, #tpu.memory_space<vmem>>, vector<1x256xf32>,
    %cst_11 = arith.constant 0.000000e+00 : f32
    %15 = vector.broadcast %cst_11 : f32 to vector<1x256xf32>
    %c0_12 = arith.constant 0 : index
    %c0_13 = arith.constant 0 : index
    %16 = vector.load %arg16[%c0_12, %c0_13] : memref<1x256xf32, #tpu.memory_space<vmem>>, vector<1x256xf32>
    tpu.vector_store %arg16[%c0_12, %c0_13], %15 {strides = array<i32>} : memref<1x256xf32, #tpu.memory_space<vmem>>, vector<1x256xf32>,
    %cst_14 = arith.constant 0.000000e+00 : f32
    %17 = vector.broadcast %cst_14 : f32 to vector<8x256xf32>
    %c0_15 = arith.constant 0 : index
    %c0_16 = arith.constant 0 : index
    %18 = vector.load %arg17[%c0_15, %c0_16] : memref<8x256xf32, #tpu.memory_space<vmem>>, vector<8x256xf32>
    tpu.vector_store %arg17[%c0_15, %c0_16], %17 {strides = array<i32>} : memref<8x256xf32, #tpu.memory_space<vmem>>, vector<8x256xf32>,
    %c0_i32_17 = arith.constant 0 : i32
    %c256_i32 = arith.constant 256 : i32
    %19 = arith.muli %c0_i32_17, %c256_i32 : i32
    %20 = tpu.assume_multiple %19, 256 : i32
    %c0_18 = arith.constant 0 : index
    %c0_19 = arith.constant 0 : index
    %c0_20 = arith.constant 0 : index
    %21 = arith.index_cast %20 : i32 to index
    %22 = vector.load %arg3[%c0_18, %c0_19, %c0_20, %21] : memref<1x1x8x256xf32, #tpu.memory_space<vmem>>, vector<1x1x8x256xf32>
    %23 = vector.shape_cast %22 : vector<1x1x8x256xf32> to vector<8x256xf32>
    %c0_21 = arith.constant 0 : index
    %c0_22 = arith.constant 0 : index
    %c0_23 = arith.constant 0 : index
    %24 = vector.load %arg8[%c0_21, %c0_22, %c0_23] : memref<1x16x8xbf16, #tpu.memory_space<vmem>>, vector<1x16x8xbf16>
    %25 = vector.shape_cast %24 : vector<1x16x8xbf16> to vector<16x8xbf16>
    %26 = arith.truncf %23 : vector<8x256xf32> to vector<8x256xbf16>
    %cst_24 = arith.constant dense<0.000000e+00> : vector<16x256xf32>
    %27 = tpu.matmul %25, %26, %cst_24 {dimension_numbers = #tpu.dot_dimension_numbers<[1], [0], [0], [1], [0, 0, 1, 1], [], []>} : vector<16x8xbf16>, vector<8x256xbf16>, vector<16x256xf32> -> vector<16x256xf32>
    %c0_25 = arith.constant 0 : index
    %c0_26 = arith.constant 0 : index
    %c0_27 = arith.constant 0 : index
    %28 = vector.load %arg9[%c0_25, %c0_26, %c0_27] : memref<1x16x1xf32, #tpu.memory_space<vmem>>, vector<1x16x1xf32>
    %29 = vector.shape_cast %28 : vector<1x16x1xf32> to vector<16x1xf32>
    %30 = vector.broadcast %29 : vector<16x1xf32> to vector<16x256xf32>
    %31 = arith.addf %27, %30 : vector<16x256xf32>
    %32 = vector.extract_strided_slice %31 {offsets = [0, 0], sizes = [8, 256], strides = [1, 1]} : vector<16x256xf32> to vector<8x256xf32>
    %33 = arith.truncf %32 : vector<8x256xf32> to vector<8x256xbf16>
    %34 = vector.extract_strided_slice %31 {offsets = [8, 0], sizes = [8, 256], strides = [1, 1]} : vector<16x256xf32> to vector<8x256xf32>
    %35 = arith.truncf %34 : vector<8x256xf32> to vector<8x256xbf16>
    %cst_28 = arith.constant dense<0.000000e+00> : vector<256x256xf32>
    %36 = tpu.matmul %33, %12, %cst_28 {dimension_numbers = #tpu.dot_dimension_numbers<[0], [0], [1], [1], [0, 1, 1, 1], [], []>} : vector<8x256xbf16>, vector<8x256xbf16>, vector<256x256xf32> -> vector<256x256xf32>
    %c0_29 = arith.constant 0 : index
    %c0_30 = arith.constant 0 : index
    %37 = vector.load %arg15[%c0_29, %c0_30] : memref<1x256xf32, #tpu.memory_space<vmem>>, vector<1x256xf32>
    %cst_31 = arith.constant dense<0xFF800000> : vector<256xf32>
    %38 = vector.multi_reduction <maximumf>, %36, %cst_31 [0] : vector<256x256xf32> to vector<256xf32>
    %39 = vector.shape_cast %38 : vector<256xf32> to vector<1x256xf32>
    %40 = arith.maximumf %37, %39 : vector<1x256xf32>
    %41 = arith.subf %37, %40 : vector<1x256xf32>
    %42 = math.exp %41 : vector<1x256xf32>
    %43 = vector.broadcast %40 : vector<1x256xf32> to vector<256x256xf32>
    %44 = arith.subf %36, %43 : vector<256x256xf32>
    %45 = math.exp %44 : vector<256x256xf32>
    %c0_32 = arith.constant 0 : index
    %c0_33 = arith.constant 0 : index
    %46 = vector.load %arg16[%c0_32, %c0_33] : memref<1x256xf32, #tpu.memory_space<vmem>>, vector<1x256xf32>
    %47 = arith.mulf %42, %46 : vector<1x256xf32>
    %cst_34 = arith.constant dense<0.000000e+00> : vector<256xf32>
    %48 = vector.multi_reduction <add>, %45, %cst_34 [0] : vector<256x256xf32> to vector<256xf32>
    %49 = vector.shape_cast %48 : vector<256xf32> to vector<1x256xf32>
    %50 = arith.addf %47, %49 : vector<1x256xf32>
    %c0_35 = arith.constant 0 : index
    %c0_36 = arith.constant 0 : index
    %51 = vector.load %arg16[%c0_35, %c0_36] : memref<1x256xf32, #tpu.memory_space<vmem>>, vector<1x256xf32>
    tpu.vector_store %arg16[%c0_35, %c0_36], %50 {strides = array<i32>} : memref<1x256xf32, #tpu.memory_space<vmem>>, vector<1x256xf32>,
    %c0_37 = arith.constant 0 : index
    %c0_38 = arith.constant 0 : index
    %52 = vector.load %arg17[%c0_37, %c0_38] : memref<8x256xf32, #tpu.memory_space<vmem>>, vector<8x256xf32>
    %53 = vector.broadcast %42 : vector<1x256xf32> to vector<8x256xf32>
    %54 = arith.mulf %53, %52 : vector<8x256xf32>
    %55 = arith.truncf %45 : vector<256x256xf32> to vector<256x256xbf16>
    %cst_39 = arith.constant dense<0.000000e+00> : vector<8x256xf32>
    %56 = tpu.matmul %35, %55, %cst_39 {dimension_numbers = #tpu.dot_dimension_numbers<[1], [0], [0], [1], [0, 0, 1, 1], [], []>} : vector<8x256xbf16>, vector<256x256xbf16>, vector<8x256xf32> -> vector<8x256xf32>
    %57 = arith.addf %54, %56 : vector<8x256xf32>
    %c0_40 = arith.constant 0 : index
    %c0_41 = arith.constant 0 : index
    %58 = vector.load %arg17[%c0_40, %c0_41] : memref<8x256xf32, #tpu.memory_space<vmem>>, vector<8x256xf32>
    tpu.vector_store %arg17[%c0_40, %c0_41], %57 {strides = array<i32>} : memref<8x256xf32, #tpu.memory_space<vmem>>, vector<8x256xf32>,
    %c0_42 = arith.constant 0 : index
    %c0_43 = arith.constant 0 : index
    %59 = vector.load %arg15[%c0_42, %c0_43] : memref<1x256xf32, #tpu.memory_space<vmem>>, vector<1x256xf32>
    tpu.vector_store %arg15[%c0_42, %c0_43], %40 {strides = array<i32>} : memref<1x256xf32, #tpu.memory_space<vmem>>, vector<1x256xf32>,
    %c1_i32 = arith.constant 1 : i32
    %c0_44 = arith.constant 0 : index
    %c0_45 = arith.constant 0 : index
    %60 = vector.load %arg17[%c0_44, %c0_45] : memref<8x256xf32, #tpu.memory_space<vmem>>, vector<8x256xf32>
    %c0_46 = arith.constant 0 : index
    %c0_47 = arith.constant 0 : index
    %61 = vector.load %arg16[%c0_46, %c0_47] : memref<1x256xf32, #tpu.memory_space<vmem>>, vector<1x256xf32>
    %62 = tpu.reciprocal %61 {approx = true} : vector<1x256xf32> -> vector<1x256xf32>
    %63 = vector.broadcast %62 : vector<1x256xf32> to vector<8x256xf32>
    %64 = arith.mulf %60, %63 : vector<8x256xf32>
    %c0_48 = arith.constant 0 : index
    %c0_49 = arith.constant 0 : index
    %65 = vector.load %arg14[%c0_48, %c0_49] : memref<8x256xf32, #tpu.memory_space<vmem>>, vector<8x256xf32>
    %c0_50 = arith.constant 0 : index
    %c0_51 = arith.constant 0 : index
    %c0_52 = arith.constant 0 : index
    %66 = vector.load %arg10[%c0_50, %c0_51, %c0_52] : memref<1x8x8xbf16, #tpu.memory_space<vmem>>, vector<1x8x8xbf16>
    %67 = vector.shape_cast %66 : vector<1x8x8xbf16> to vector<8x8xbf16>
    %68 = arith.truncf %64 : vector<8x256xf32> to vector<8x256xbf16>
    %cst_53 = arith.constant dense<0.000000e+00> : vector<8x256xf32>
    %69 = tpu.matmul %67, %68, %cst_53 {dimension_numbers = #tpu.dot_dimension_numbers<[1], [0], [0], [1], [0, 0, 1, 1], [], []>} : vector<8x8xbf16>, vector<8x256xbf16>, vector<8x256xf32> -> vector<8x256xf32>
    %70 = arith.addf %65, %69 : vector<8x256xf32>
    %c0_54 = arith.constant 0 : index
    %c0_55 = arith.constant 0 : index
    %71 = vector.load %arg14[%c0_54, %c0_55] : memref<8x256xf32, #tpu.memory_space<vmem>>, vector<8x256xf32>
    tpu.vector_store %arg14[%c0_54, %c0_55], %70 {strides = array<i32>} : memref<8x256xf32, #tpu.memory_space<vmem>>, vector<8x256xf32>,
    %c3_i32 = arith.constant 3 : i32
    %72 = arith.cmpi eq, %arg1, %c3_i32 : i32
    %73 = arith.extui %72 : i1 to i32
    %c0_i32_56 = arith.constant 0 : i32
    %74 = arith.cmpi ne, %73, %c0_i32_56 : i32
    scf.if %74 {
      %c0_57 = arith.constant 0 : index
      %c0_58 = arith.constant 0 : index
      %75 = vector.load %arg14[%c0_57, %c0_58] : memref<8x256xf32, #tpu.memory_space<vmem>>, vector<8x256xf32>
      %c0_59 = arith.constant 0 : index
      %c0_60 = arith.constant 0 : index
      %c0_61 = arith.constant 0 : index
      %76 = vector.load %arg12[%c0_59, %c0_60, %c0_61] : memref<1x8x256xf32, #tpu.memory_space<vmem>>, vector<1x8x256xf32>
      %77 = vector.shape_cast %76 : vector<1x8x256xf32> to vector<8x256xf32>
      %78 = vector.shape_cast %75 : vector<8x256xf32> to vector<1x8x256xf32>
      tpu.vector_store %arg12[%c0_59, %c0_60, %c0_61], %78 {strides = array<i32>} : memref<1x8x256xf32, #tpu.memory_space<vmem>>, vector<1x8x256xf32>,
    } else {
    }
    return
  }
  func.func @transform_0(%arg0: i32, %arg1: i32) -> (i32, i32, i32, i32) {
    %c0_i32 = arith.constant 0 : i32
    %c0_i32_0 = arith.constant 0 : i32
    %c0_i32_1 = arith.constant 0 : i32
    %c0_i32_2 = arith.constant 0 : i32
    return %arg0, %c0_i32, %c0_i32_0, %c0_i32_1 : i32, i32, i32, i32
  }
  func.func @transform_1(%arg0: i32, %arg1: i32) -> (i32, i32, i32, i32) {
    %c0_i32 = arith.constant 0 : i32
    %c0_i32_0 = arith.constant 0 : i32
    %c0_i32_1 = arith.constant 0 : i32
    return %arg0, %arg1, %c0_i32, %c0_i32_0 : i32, i32, i32, i32
  }
  func.func @transform_2(%arg0: i32, %arg1: i32) -> (i32, i32, i32) {
    %c0_i32 = arith.constant 0 : i32
    %c0_i32_0 = arith.constant 0 : i32
    %c0_i32_1 = arith.constant 0 : i32
    %c0_i32_2 = arith.constant 0 : i32
    return %c0_i32, %c0_i32_0, %c0_i32_1 : i32, i32, i32
  }
  func.func @transform_3(%arg0: i32, %arg1: i32) -> (i32, i32) {
    %c0_i32 = arith.constant 0 : i32
    %c0_i32_0 = arith.constant 0 : i32
    %c0_i32_1 = arith.constant 0 : i32
    return %c0_i32, %c0_i32_0 : i32, i32
  }
  func.func @transform_4(%arg0: i32, %arg1: i32) -> (i32, i32, i32) {
    %c0_i32 = arith.constant 0 : i32
    %c0_i32_0 = arith.constant 0 : i32
    %c0_i32_1 = arith.constant 0 : i32
    return %arg1, %c0_i32, %c0_i32_0 : i32, i32, i32
  }
  func.func @transform_5(%arg0: i32, %arg1: i32) -> (i32, i32, i32) {
    %c0_i32 = arith.constant 0 : i32
    %c0_i32_0 = arith.constant 0 : i32
    %c0_i32_1 = arith.constant 0 : i32
    return %arg1, %c0_i32, %c0_i32_0 : i32, i32, i32
  }
  func.func @transform_6(%arg0: i32, %arg1: i32) -> (i32, i32, i32) {
    %c0_i32 = arith.constant 0 : i32
    %c0_i32_0 = arith.constant 0 : i32
    %c0_i32_1 = arith.constant 0 : i32
    return %arg1, %c0_i32, %c0_i32_0 : i32, i32, i32
  }
  func.func @transform_7(%arg0: i32, %arg1: i32) -> (i32, i32, i32) {
    %c0_i32 = arith.constant 0 : i32
    %c0_i32_0 = arith.constant 0 : i32
    %c0_i32_1 = arith.constant 0 : i32
    return %arg1, %c0_i32, %c0_i32_0 : i32, i32, i32
  }
  func.func @transform_8(%arg0: i32, %arg1: i32) -> (i32, i32, i32) {
    %c0_i32 = arith.constant 0 : i32
    %c0_i32_0 = arith.constant 0 : i32
    %c0_i32_1 = arith.constant 0 : i32
    return %arg1, %c0_i32, %c0_i32_0 : i32, i32, i32
  }
  func.func @transform_9(%arg0: i32, %arg1: i32) -> (i32, i32) {
    %c0_i32 = arith.constant 0 : i32
    %c0_i32_0 = arith.constant 0 : i32
    %c0_i32_1 = arith.constant 0 : i32
    return %c0_i32, %c0_i32_0 : i32, i32
  }
  func.func @transform_10(%arg0: i32, %arg1: i32) -> (i32, i32, i32) {
    %c0_i32 = arith.constant 0 : i32
    %c0_i32_0 = arith.constant 0 : i32
    %c0_i32_1 = arith.constant 0 : i32
    return %arg0, %c0_i32, %c0_i32_0 : i32, i32, i32
  }
}

</mosaic_0001>

<bundles_post_ra>
// kernel: spatial_attention_block.1
= control target key start
LH: loop header
LB: loop body
LE: loop exit
PB: predicated region body
PF: predicated region fallthrough
CT: control target
= control target key end

     0   :  { %s2066_s13 = smov 0   ;;  %s2068_s14 = smov 0   ;;  %s2839_s0 = inlined_call_operand.vmem [shape: f32[2,4,8,256], index: 0, kind: input, shape index: {}]   ;;  %s2840_s1 = inlined_call_operand.vmem [shape: f32[2,4,8,256], index: 1, kind: input, shape index: {}]   ;;  %s2841_s2 = inlined_call_operand.vmem [shape: f32[4,8,1], index: 2, kind: input, shape index: {}]   ;;  %s2842_s3 = inlined_call_operand.vmem [shape: f32[8,1], index: 3, kind: input, shape index: {}]   ;;  %s2843_s4 = inlined_call_operand.vmem [shape: bf16[4,8,8], index: 4, kind: input, shape index: {}]   ;;  %s2844_s5 = inlined_call_operand.vmem [shape: f32[4,8,1], index: 5, kind: input, shape index: {}]   ;;  %s2845_s6 = inlined_call_operand.vmem [shape: bf16[4,16,8], index: 6, kind: input, shape index: {}]   ;;  %s2846_s7 = inlined_call_operand.vmem [shape: f32[4,16,1], index: 7, kind: input, shape index: {}]   ;;  %s2847_s8 = inlined_call_operand.vmem [shape: bf16[4,8,8], index: 8, kind: input, shape index: {}]   ;;  %s2848_s9 = inlined_call_operand.vmem [shape: f32[8,1], index: 9, kind: input, shape index: {}]   ;;  %s2849_s10 = inlined_call_operand.vmem [shape: f32[2,8,256], index: 10, kind: output, shape index: {}]  }
   0x1   :  { %2914 = sst [smem:[#allocation44_spill]] %s2839_s0  ;;  %s2070_s15 = smov 0  }
   0x2   :  { %2915 = sst [smem:[#allocation45_spill]] %s2840_s1  ;;  %s2072_s16 = smov 0  }
   0x3   :  { %2916 = sst [smem:[#allocation46_spill]] %s2848_s9  ;;  %s2074_s17 = smov 0  }
   0x4 LB: > { %2917 = sst [smem:[#allocation7_spill]] %s1996_s15  ;;  %s29_s18 = sadd.s32 1, %s1996_s15  ;;  %s2004_s17 = sphi %s2074_s17, %s20_s17   ;;  %s2000_s16 = sphi %s2072_s16, %s3074_s16   ;;  %s1996_s15 = sphi %s2070_s15, %s3073_s15   ;;  %s1992_s14 = sphi %s2068_s14, %s3072_s14   ;;  %s1988_s13 = sphi %s2066_s13, %s3071_s13  }
   0x5   : > { %2918 = sst [smem:[#allocation8_spill]] %s2000_s16  ;;  %s32_s19 = sadd.s32 1, %s2000_s16 }
   0x6   : > { %2919 = sst [smem:[#allocation9_spill]] %s2004_s17  ;;  %p30_p0 = scmp.ge.s32.totalorder %s29_s18, 4 }
   0x7   : > { %p1729_p1 = scmp.ge.s32.totalorder %s2004_s17, 1  ;;  %p387_p2 = scmp.lt.s32.totalorder %s2004_s17, 9 }
   0x8   : > { %s3076_s18 = smov (%p30_p0, %s29_s18), 0  ;;  %s3078_s19 = smov (!%p30_p0, %s32_s19), %s2000_s16 }
   0x9   : > { %2920 = sst [smem:[#allocation10_spill]] %s3076_s18  ;;  %p388_p3 = pnand %p1729_p1, %p387_p2 }
   0xa   : > { %p34_p4 = scmp.ge.s32.totalorder %s3078_s19, 2 }
   0xb   : > { %391 = sbr.rel (%p388_p3) target bundleno = 1398 (0x576), region = 60 }
   0xc   : > { %s3080_s19 = smov (%p34_p4, %s3078_s19), 0 }
   0xd   : > { %2921 = sst [smem:[#allocation11_spill]] %s3080_s19 }
  0x12   : > { %p456_p5 = scmp.lt.s32.totalorder %s1992_s14, 1  ;;  %p463_p6 = scmp.lt.s32.totalorder %s1988_s13, 3 }
  0x13   : > { %s2922_s0 = sld [smem:[#allocation44_spill]]  ;;  %s2923_s1 = sld [smem:[#allocation45_spill]] }
  0x14   : > { %s3082_s14 = smov (!%p456_p5, %s1992_s14), 1  ;;  %p1744_p7 = scmp.ne.s32.totalorder %s1988_s13, 0 }
  0x15   : > { %s464_s20 = scalar_select %p463_p6, %s1988_s13, 3 }
  0x16   : > { %s1781_s21 = sshll.u32 %s3082_s14, 6  ;;  %s1733_s22 = sshll.u32 %s3082_s14, 3  ;;  %v1747_v0 = vld [vmem:[%s2841_s2 + $0x8] sm:$0xff] (!%p1744_p7)  ;;  %v505_v1 = vld [vmem:[%s2841_s2] sm:$0xff] (!%p1744_p7)  ;;  %v2006_v2 = vmov (!%p1744_p7), 0   ;;  %v1750_v3 = vld [vmem:[%s2841_s2 + $0x10] sm:$0xff] (!%p1744_p7) }
  0x17   : > { %s1732_s26 = sshll.u32 %s464_s20, 1  ;;  %s1735_s28 = sshll.u32 %s464_s20, 2  ;;  %1831 = vset.pattern.permute.xlu1 (!%p1744_p7), %v2006_v2  ;;  %1830 = vset.pattern.permute.xlu0 (!%p1744_p7), %v2006_v2  ;;  %v502_v4 = vld [vmem:[%s2842_s3] sm:$0xff] (!%p1744_p7)  ;;  %v1753_v6 = vld [vmem:[%s2841_s2 + $0x18] sm:$0xff] (!%p1744_p7) }
  0x18   : > { %s467_s27 = sadd.s32 %s1733_s22, %s1732_s26  ;;  %s2108_s12 = scalar_lea.vmem %s2843_s4, %s1735_s28  ;;  %527 = vperm.xlu1 (!%p1744_p7), %1831, %v1747_v0   ;;  %508 = vperm.xlu0 (!%p1744_p7), %1830, %v505_v1  }
  0x19   : > { %s2103_s25 = scalar_lea.vmem %s2922_s0, %s1781_s21  ;;  %s1734_s29 = sshll.u32 %s467_s27, 3 }
  0x1a   : > { %s2113_s16 = scalar_lea.vmem %s2923_s1, %s1734_s29  ;;  %s1736_s15 = sshll.u32 %s464_s20, 3  ;;  %v503_v9 = vld [vmem:[%s2103_s25] sm:$0xff] (!%p1744_p7)  ;;  %v504_v10 = vld [vmem:[%s2103_s25 + $0x8] sm:$0xff] (!%p1744_p7)  ;;  %v1745_v11 = vld [vmem:[%s2103_s25 + $0x10] sm:$0xff] (!%p1744_p7) }
  0x1b   : > { %s2118_s21 = scalar_lea.vmem %s2844_s5, %s1736_s15  ;;  %s2123_s24 = scalar_lea.vmem %s2845_s6, %s1736_s15  ;;  %v1746_v12 = vld [vmem:[%s2103_s25 + $0x18] sm:$0xff] (!%p1744_p7)  ;;  %v1748_v15 = vld [vmem:[%s2103_s25 + $0x20] sm:$0xff] (!%p1744_p7)  ;;  %v1749_v16 = vld [vmem:[%s2103_s25 + $0x28] sm:$0xff] (!%p1744_p7) }
  0x1c   : > { %s1783_s26 = sshll.u32 %s464_s20, 4  ;;  %s2128_s11 = scalar_lea.vmem %s2847_s8, %s1735_s28  ;;  %541 = vperm.xlu1 (!%p1744_p7), %1831, %v1750_v3   ;;  %515 = vperm.xlu0 (!%p1744_p7), %1830, %v502_v4   ;;  %v1751_v23 = vld [vmem:[%s2103_s25 + $0x30] sm:$0xff] (!%p1744_p7)  ;;  %v1752_v24 = vld [vmem:[%s2103_s25 + $0x38] sm:$0xff] (!%p1744_p7) }
  0x1d   : > { %s2133_s29 = scalar_lea.vmem %s2846_s7, %s1783_s26  ;;  %s1784_s0 = sshll.u32 %s3082_s14, 4 }
  0x1e   : > { %s2138_s1 = scalar_lea.vmem %s2849_s10, %s1784_s0  ;;  %501 = sbr.rel (%p1744_p7) target bundleno = 169 (0xa9), region = 64 }
  0x1f   : > { %s2924_s18 = sld [smem:[#allocation46_spill]] (!%p1744_p7) }
  0x20   : > { %555 = vperm.xlu0 (!%p1744_p7), %1830, %v1753_v6  }
  0x25   : > { %v564_v5 = vld [vmem:[%s2924_s18] sm:$0xff] }
  0x26   : > { %567 = vperm.xlu1 %1831, %v564_v5  }
  0x97   : > { %v528_v7 = vpop.permute.xlu1 %527  ;;  %v509_v8 = vpop.permute.xlu0 %508 }
  0x98   : > { %v511_v13 = vmul.f32 %v509_v8, %v503_v9  ;;  %v512_v14 = vmul.f32 %v509_v8, %v504_v10  ;;  %v530_v19 = vmul.f32 %v1745_v11, %v528_v7  ;;  %v531_v20 = vmul.f32 %v1746_v12, %v528_v7 }
  0x9b   : > { %v542_v17 = vpop.permute.xlu1 %541  ;;  %v516_v18 = vpop.permute.xlu0 %515 }
  0x9c   : > { %v518_v21 = vadd.f32 %v516_v18, %v511_v13  ;;  %v519_v22 = vadd.f32 %v516_v18, %v512_v14  ;;  %v544_v25 = vmul.f32 %v1748_v15, %v542_v17  ;;  %v545_v26 = vmul.f32 %v1749_v16, %v542_v17 }
  0x9e   : > { %v532_v27 = vadd.f32 %v530_v19, %v518_v21  ;;  %v533_v28 = vadd.f32 %v531_v20, %v519_v22 }
  0x9f   : > { %v556_v29 = vpop.permute.xlu0 %555 }
  0xa0   : > { %v546_v30 = vadd.f32 %v544_v25, %v532_v27  ;;  %v547_v31 = vadd.f32 %v545_v26, %v533_v28  ;;  %v558_v32 = vmul.f32 %v1751_v23, %v556_v29  ;;  %v559_v33 = vmul.f32 %v1752_v24, %v556_v29 }
  0xa2   : > { %v560_v34 = vadd.f32 %v558_v32, %v546_v30  ;;  %v561_v35 = vadd.f32 %v559_v33, %v547_v31 }
  0xa4   : > { %562 = vst [vmem:[#allocation2] sm:$0xff] %v560_v34  ;;  %563 = vst [vmem:[#allocation2 + $0x8] sm:$0xff] %v561_v35 }
  0xa5   : > { %v568_v36 = vpop.permute.xlu1 %567 }
  0xa6   : > { %v570_v37 = vadd.f32 %v568_v36, %v560_v34  ;;  %v571_v38 = vadd.f32 %v568_v36, %v561_v35 }
  0xa8   : > { %572 = vst [vmem:[#allocation3] sm:$0xff] %v570_v37  ;;  %573 = vst [vmem:[#allocation3 + $0x8] sm:$0xff] %v571_v38 }
  0xa9 PF: > { %vm589_vm0 = vcmask 1043456   ;;  %v2853_v43 = vmov 0   ;;  %v648_v44 = vld [vmem:[%s2113_s16 + $0x8] sm:$0xff]  ;;  %v647_v45 = vld [vmem:[%s2113_s16] sm:$0xff]  ;;  %vm585_vm1 = vcmask 64512   ;;  %v2854_v34 = vlaneseq  ;;  %p1778_p8 = scmp.ne.s32.totalorder %s1988_s13, 3 }
  0xaa   : > { %628 = vmatprep.mubr.bf16.mxu1 %v2853_v43  ;;  %1832 = vset.pattern.permute.xlu0 %v2853_v43  ;;  %v652_v46 = vpack.c.bf16 %v648_v44, %v648_v44  ;;  %v651_v47 = vpack.c.bf16 %v647_v45, %v647_v45  ;;  %v653_v48 = vld [vmem:[%s2133_s29] sm:$0xff]  ;;  %v654_v53 = vld [vmem:[%s2133_s29 + $0x8] sm:$0xff]  ;;  %v2926_v38 = vmov 0 }
  0xab   : > { %v576_v39 = vld [vmem:[#allocation2 + $0x8] sm:$0xff]  ;;  %v575_v40 = vld [vmem:[#allocation2] sm:$0xff]  ;;  %844 = vmatprep.mubr.bf16.mxu0 %v2853_v43  ;;  %657 = vperm.xlu0 %1832, %v653_v48   ;;  %vm2234_vm2 = vcmp.lt.s32.totalorder %v2854_v34, 256 }
  0xac   : > { %v578_v41 = vpack.c.bf16 %v576_v39, %v576_v39  ;;  %v577_v42 = vpack.c.bf16 %v575_v40, %v575_v40  ;;  %v574_v50 = vld [vmem:[%s2108_s12] sm:$0xf]  ;;  %v674_v52 = vsel %vm589_vm0, %v651_v47, 0  ;;  %v2927_v38 = vsel %vm2234_vm2, 4294967295, %v2926_v38 }
  0xad   : > { %v579_v51 = vld [vmem:[%s2118_s21] sm:$0xff]  ;;  %2928 = vst [vmem:[#allocation13_spill] sm:$0xff] %v2927_v38 }
  0xae   : > { %1754 = vmatprep.subr.msk.bf16.mxu1 %vm589_vm0, %v578_v41  ;;  %v591_v49 = vsel %vm589_vm0, %v577_v42, 0  ;;  %v1833_v54 = vld [vmem:[%s2123_s24] sm:$0xff]   ;;  %v2008_v41 = vmov -inf   ;;  %v2009_v42 = vmov 0.0  }
  0xaf   : > { %597 = vmatpush1.bf16.msra.mxu1 %v591_v49  ;;  %582 = vperm.xlu0 %1832, %v579_v51   ;;  %643 = vst.msk [vmem:[#allocation4] sm:$0x3] %vm2234_vm2, %v2008_v41  ;;  %644 = vst.msk [vmem:[#allocation5] sm:$0x3] %vm2234_vm2, %v2009_v42 }
  0xb0   : > { %1757 = vmatprep.subr.msk.bf16.mxu1 %vm589_vm0, %v652_v46 }
  0xb2   : > { %1755 = vmatmul.mubr.msk.bf16.vlgmr.msra.gmra.mrb[0].mxu1 %vm585_vm1, %v574_v50 }
  0xb3   : > { %680 = vmatpush1.bf16.msra.mxu1 %v674_v52  ;;  %711 = vmatprep.mubr.bf16.mxu1 %v2853_v43 }
  0xb4   : > { %662 = vperm.xlu0 %1832, %v654_v53  }
  0xba   : > { %1758 = vmatmul.mubr.msk.bf16.vlgmr.msra.gmra.mrb[4].mxu1 %vm585_vm1, %v1833_v54 }
 0x12a   : > { %v658_v55 = vpop.permute.xlu0 %657 }
 0x12e   : > { %v583_v56 = vpop.permute.xlu0 %582 }
 0x133   : > { %v663_v5 = vpop.permute.xlu0 %662 }
 0x185   : > { %v630_v57 = vpop.f32.mrb[0].mxu1 }
 0x186   : > { %v631_v58 = vadd.f32 %v630_v57, %v583_v56  ;;  %v632_v59 = vpop.f32.mrb[1].mxu1 }
 0x187   : > { %v633_v60 = vadd.f32 %v632_v59, %v583_v56  ;;  %v634_v61 = vpop.f32.mrb[2].mxu1 }
 0x188   : > { %v637_v62 = vpack.c.bf16 %v631_v58, %v631_v58  ;;  %v635_v63 = vpop.f32.mrb[3].mxu1 }
 0x189   : > { %v638_v0 = vpack.c.bf16 %v633_v60, %v633_v60 }
 0x18a   : > { %v807_v1 = vsel %vm589_vm0, %v637_v62, 0 }
 0x18b   : > { %1759 = vmatprep.subr.msk.bf16.mxu0 %vm589_vm0, %v638_v0 }
 0x18c   : > { %813 = vmatpush1.bf16.msra.mxu0 %v807_v1 }
 0x18d   : > { %v713_v2 = vpop.f32.mrb[4].mxu1 }
 0x18e   : > { %v715_v3 = vpop.f32.mrb[5].mxu1  ;;  %v714_v4 = vadd.f32 %v713_v2, %v658_v55 }
 0x18f   : > { %v717_v6 = vpop.f32.mrb[6].mxu1  ;;  %v716_v12 = vadd.f32 %v715_v3, %v658_v55 }
 0x190   : > { %v2186_v7 = vadd.f32 %v717_v6, %v663_v5  ;;  %v719_v8 = vpop.f32.mrb[7].mxu1  ;;  %v722_v9 = vpack.c.bf16 %v714_v4, %v714_v4 }
 0x191   : > { %v720_v10 = vadd.f32 %v719_v8, %v663_v5  ;;  %v723_v13 = vpack.c.bf16 %v716_v12, %v716_v12 }
 0x192   : > { %2925 = vst [vmem:[#allocation12_spill] sm:$0xff] %v2186_v7  ;;  %726 = vxpose.xlu1.c.b16.start.end [1/1] (short) %v722_v9, 128 }
 0x193   : > { %v725_v11 = vpack.c.bf16 %v720_v10, %v720_v10 }
 0x195   : > { %1480 = vmatprep.mubr.bf16.mxu1 %v725_v11 }
 0x1af   : > { %742 = vxpose.xlu1.c.b16.start.end [1/1] (short) %v723_v13, 128 }
 0x1f8   : > { %v734_v14 = vpop.trf.xlu1 }
 0x1f9   : > { %1760 = vmatmul.mubr.msk.bf16.vlgmr.msra.gmra.mrb[0].mxu0 %vm585_vm1, %v734_v14 }
 0x1fa   : > { %854 = vmatprep.mubr.bf16.mxu0 %v2853_v43 }
 0x1fc   : > { %v735_v15 = vpop.trf.xlu1 }
 0x200   : > { %v736_v16 = vpop.trf.xlu1 }
 0x201   : > { %1761 = vmatmul.mubr.msk.bf16.gmra.mrb[4].mxu0 %vm585_vm1, %v735_v15 }
 0x202   : > { %864 = vmatprep.mubr.bf16.mxu0 %v2853_v43 }
 0x204   : > { %v737_v17 = vpop.trf.xlu1 }
 0x208   : > { %v738_v18 = vpop.trf.xlu1 }
 0x209   : > { %1762 = vmatmul.mubr.msk.bf16.gmra.mrb[8].mxu0 %vm585_vm1, %v736_v16 }
 0x20a   : > { %874 = vmatprep.mubr.bf16.mxu0 %v2853_v43 }
 0x20c   : > { %v739_v19 = vpop.trf.xlu1 }
 0x210   : > { %v740_v20 = vpop.trf.xlu1 }
 0x211   : > { %1763 = vmatmul.mubr.msk.bf16.gmra.mrb[12].mxu0 %vm585_vm1, %v737_v17 }
 0x212   : > { %884 = vmatprep.mubr.bf16.mxu0 %v2853_v43 }
 0x214   : > { %v741_v21 = vpop.trf.xlu1 }
 0x218   : > { %v750_v22 = vpop.trf.xlu1 }
 0x219   : > { %1764 = vmatmul.mubr.msk.bf16.gmra.mrb[16].mxu0 %vm585_vm1, %v738_v18 }
 0x21a   : > { %894 = vmatprep.mubr.bf16.mxu0 %v2853_v43 }
 0x21c   : > { %v751_v23 = vpop.trf.xlu1 }
 0x220   : > { %v752_v24 = vpop.trf.xlu1 }
 0x221   : > { %1765 = vmatmul.mubr.msk.bf16.gmra.mrb[20].mxu0 %vm585_vm1, %v739_v19 }
 0x222   : > { %904 = vmatprep.mubr.bf16.mxu0 %v2853_v43 }
 0x224   : > { %v753_v25 = vpop.trf.xlu1 }
 0x228   : > { %v754_v26 = vpop.trf.xlu1 }
 0x229   : > { %1766 = vmatmul.mubr.msk.bf16.gmra.mrb[24].mxu0 %vm585_vm1, %v740_v20 }
 0x22a   : > { %914 = vmatprep.mubr.bf16.mxu0 %v2853_v43 }
 0x22c   : > { %v755_v27 = vpop.trf.xlu1 }
 0x230   : > { %v756_v28 = vpop.trf.xlu1 }
 0x231   : > { %1767 = vmatmul.mubr.msk.bf16.gmra.mrb[28].mxu0 %vm585_vm1, %v741_v21 }
 0x232   : > { %924 = vmatprep.mubr.bf16.mxu0 %v2853_v43 }
 0x234   : > { %v757_v29 = vpop.trf.xlu1 }
 0x239   : > { %1768 = vmatmul.mubr.msk.bf16.gmra.mrb[32].mxu0 %vm585_vm1, %v750_v22 }
 0x23a   : > { %934 = vmatprep.mubr.bf16.mxu0 %v2853_v43 }
 0x241   : > { %1769 = vmatmul.mubr.msk.bf16.gmra.mrb[36].mxu0 %vm585_vm1, %v751_v23 }
 0x242   : > { %944 = vmatprep.mubr.bf16.mxu0 %v2853_v43 }
 0x249   : > { %1770 = vmatmul.mubr.msk.bf16.gmra.mrb[40].mxu0 %vm585_vm1, %v752_v24 }
 0x24a   : > { %954 = vmatprep.mubr.bf16.mxu0 %v2853_v43 }
 0x251   : > { %1771 = vmatmul.mubr.msk.bf16.gmra.mrb[44].mxu0 %vm585_vm1, %v753_v25 }
 0x252   : > { %964 = vmatprep.mubr.bf16.mxu0 %v2853_v43 }
 0x259   : > { %1772 = vmatmul.mubr.msk.bf16.gmra.mrb[48].mxu0 %vm585_vm1, %v754_v26 }
 0x25a   : > { %974 = vmatprep.mubr.bf16.mxu0 %v2853_v43 }
 0x261   : > { %1773 = vmatmul.mubr.msk.bf16.gmra.mrb[52].mxu0 %vm585_vm1, %v755_v27 }
 0x262   : > { %984 = vmatprep.mubr.bf16.mxu0 %v2853_v43 }
 0x269   : > { %1774 = vmatmul.mubr.msk.bf16.gmra.mrb[56].mxu0 %vm585_vm1, %v756_v28 }
 0x26a   : > { %994 = vmatprep.mubr.bf16.mxu0 %v2853_v43 }
 0x271   : > { %1775 = vmatmul.mubr.msk.bf16.gmra.mrb[60].mxu0 %vm585_vm1, %v757_v29 }
 0x2cc   : > { %v2219_v30 = vpop.f32.mrb[0].mxu0 }
 0x2cd   : > { %v2221_v31 = vpop.f32.mrb[1].mxu0 }
 0x2ce   : > { %v2223_v32 = vpop.f32.mrb[2].mxu0 }
 0x2cf   : > { %v2225_v33 = vpop.f32.mrb[3].mxu0 }
 0x2d4   : > { %v2227_v35 = vpop.f32.mrb[4].mxu0 }
 0x2d5   : > { %v1006_v36 = vmax.f32 %v2219_v30, %v2227_v35  ;;  %v2231_v37 = vpop.f32.mrb[5].mxu0 }
 0x2d6   : > { %v1043_v39 = vmax.f32 %v2221_v31, %v2231_v37  ;;  %v2240_v40 = vpop.f32.mrb[6].mxu0 }
 0x2d7   : > { %v1007_v44 = vmax.f32 %v2223_v32, %v2240_v40  ;;  %v2248_v45 = vpop.f32.mrb[7].mxu0 }
 0x2d8   : > { %v1044_v46 = vmax.f32 %v2225_v33, %v2248_v45 }
 0x2dc   : > { %v2252_v47 = vpop.f32.mrb[8].mxu0 }
 0x2dd   : > { %v1008_v48 = vmax.f32 %v1006_v36, %v2252_v47  ;;  %v2255_v49 = vpop.f32.mrb[9].mxu0 }
 0x2de   : > { %v1045_v50 = vmax.f32 %v1043_v39, %v2255_v49  ;;  %v2258_v51 = vpop.f32.mrb[10].mxu0 }
 0x2df   : > { %v1009_v52 = vmax.f32 %v1007_v44, %v2258_v51  ;;  %v2261_v53 = vpop.f32.mrb[11].mxu0 }
 0x2e0   : > { %v1046_v54 = vmax.f32 %v1044_v46, %v2261_v53 }
 0x2e4   : > { %v2264_v55 = vpop.f32.mrb[12].mxu0 }
 0x2e5   : > { %v1010_v56 = vmax.f32 %v1008_v48, %v2264_v55  ;;  %v2267_v57 = vpop.f32.mrb[13].mxu0 }
 0x2e6   : > { %v1047_v58 = vmax.f32 %v1045_v50, %v2267_v57  ;;  %v2270_v59 = vpop.f32.mrb[14].mxu0 }
 0x2e7   : > { %v1011_v60 = vmax.f32 %v1009_v52, %v2270_v59  ;;  %v2273_v61 = vpop.f32.mrb[15].mxu0 }
 0x2e8   : > { %v1048_v62 = vmax.f32 %v1046_v54, %v2273_v61 }
 0x2ec   : > { %v2276_v63 = vpop.f32.mrb[16].mxu0 }
 0x2ed   : > { %v1012_v0 = vmax.f32 %v1010_v56, %v2276_v63  ;;  %v2279_v1 = vpop.f32.mrb[17].mxu0 }
 0x2ee   : > { %v1049_v2 = vmax.f32 %v1047_v58, %v2279_v1  ;;  %v2282_v3 = vpop.f32.mrb[18].mxu0 }
 0x2ef   : > { %v1013_v4 = vmax.f32 %v1011_v60, %v2282_v3  ;;  %v2285_v5 = vpop.f32.mrb[19].mxu0 }
 0x2f0   : > { %v1050_v6 = vmax.f32 %v1048_v62, %v2285_v5 }
 0x2f4   : > { %v2288_v8 = vpop.f32.mrb[20].mxu0 }
 0x2f5   : > { %v1014_v9 = vmax.f32 %v1012_v0, %v2288_v8  ;;  %v2291_v10 = vpop.f32.mrb[21].mxu0 }
 0x2f6   : > { %v1051_v11 = vmax.f32 %v1049_v2, %v2291_v10  ;;  %v2294_v12 = vpop.f32.mrb[22].mxu0 }
 0x2f7   : > { %v1015_v13 = vmax.f32 %v1013_v4, %v2294_v12  ;;  %v2297_v14 = vpop.f32.mrb[23].mxu0 }
 0x2f8   : > { %v1052_v15 = vmax.f32 %v1050_v6, %v2297_v14 }
 0x2fc   : > { %v2300_v16 = vpop.f32.mrb[24].mxu0 }
 0x2fd   : > { %v1016_v17 = vmax.f32 %v1014_v9, %v2300_v16  ;;  %v2303_v18 = vpop.f32.mrb[25].mxu0 }
 0x2fe   : > { %v1053_v19 = vmax.f32 %v1051_v11, %v2303_v18  ;;  %v2306_v20 = vpop.f32.mrb[26].mxu0 }
 0x2ff   : > { %v1017_v21 = vmax.f32 %v1015_v13, %v2306_v20  ;;  %v2309_v22 = vpop.f32.mrb[27].mxu0 }
 0x300   : > { %v1054_v23 = vmax.f32 %v1052_v15, %v2309_v22 }
 0x304   : > { %v2312_v24 = vpop.f32.mrb[28].mxu0 }
 0x305   : > { %v1018_v25 = vmax.f32 %v1016_v17, %v2312_v24  ;;  %v2315_v26 = vpop.f32.mrb[29].mxu0 }
 0x306   : > { %v1055_v27 = vmax.f32 %v1053_v19, %v2315_v26  ;;  %v2318_v28 = vpop.f32.mrb[30].mxu0 }
 0x307   : > { %v1019_v29 = vmax.f32 %v1017_v21, %v2318_v28  ;;  %v2321_v36 = vpop.f32.mrb[31].mxu0 }
 0x308   : > { %v1056_v39 = vmax.f32 %v1054_v23, %v2321_v36 }
 0x30c   : > { %v2324_v41 = vpop.f32.mrb[32].mxu0 }
 0x30d   : > { %v1020_v42 = vmax.f32 %v1018_v25, %v2324_v41  ;;  %v2327_v44 = vpop.f32.mrb[33].mxu0 }
 0x30e   : > { %v1057_v46 = vmax.f32 %v1055_v27, %v2327_v44  ;;  %v2330_v48 = vpop.f32.mrb[34].mxu0 }
 0x30f   : > { %v1021_v50 = vmax.f32 %v1019_v29, %v2330_v48  ;;  %v2333_v52 = vpop.f32.mrb[35].mxu0 }
 0x310   : > { %v1058_v54 = vmax.f32 %v1056_v39, %v2333_v52 }
 0x314   : > { %v2336_v56 = vpop.f32.mrb[36].mxu0 }
 0x315   : > { %v1022_v58 = vmax.f32 %v1020_v42, %v2336_v56  ;;  %v2339_v60 = vpop.f32.mrb[37].mxu0 }
 0x316   : > { %v1059_v62 = vmax.f32 %v1057_v46, %v2339_v60  ;;  %v2342_v0 = vpop.f32.mrb[38].mxu0 }
 0x317   : > { %2929 = vst [vmem:[#allocation14_spill] sm:$0xff] %v2342_v0  ;;  %v1023_v2 = vmax.f32 %v1021_v50, %v2342_v0  ;;  %v2345_v4 = vpop.f32.mrb[39].mxu0 }
 0x318   : > { %2930 = vst [vmem:[#allocation15_spill] sm:$0xff] %v2345_v4  ;;  %v1060_v6 = vmax.f32 %v1058_v54, %v2345_v4 }
 0x31c   : > { %v2348_v9 = vpop.f32.mrb[40].mxu0 }
 0x31d   : > { %2931 = vst [vmem:[#allocation16_spill] sm:$0xff] %v2348_v9  ;;  %v1024_v11 = vmax.f32 %v1022_v58, %v2348_v9  ;;  %v2351_v13 = vpop.f32.mrb[41].mxu0 }
 0x31e   : > { %2932 = vst [vmem:[#allocation17_spill] sm:$0xff] %v2351_v13  ;;  %v1061_v15 = vmax.f32 %v1059_v62, %v2351_v13  ;;  %v2354_v17 = vpop.f32.mrb[42].mxu0  ;;  %v2954_v13 = vlaneseq }
 0x31f   : > { %2933 = vst [vmem:[#allocation18_spill] sm:$0xff] %v2354_v17  ;;  %v1025_v19 = vmax.f32 %v1023_v2, %v2354_v17  ;;  %v2357_v21 = vpop.f32.mrb[43].mxu0 }
 0x320   : > { %2934 = vst [vmem:[#allocation19_spill] sm:$0xff] %v2357_v21  ;;  %v1062_v23 = vmax.f32 %v1060_v6, %v2357_v21  ;;  %v1087_v9 = vshrl.u32 %v2954_v13, 7 }
 0x324   : > { %v2360_v25 = vpop.f32.mrb[44].mxu0 }
 0x325   : > { %2935 = vst [vmem:[#allocation20_spill] sm:$0xff] %v2360_v25  ;;  %v1026_v27 = vmax.f32 %v1024_v11, %v2360_v25  ;;  %v2363_v29 = vpop.f32.mrb[45].mxu0  ;;  %v2010_v25 = vmov 1966171168  }
 0x326   : > { %2936 = vst [vmem:[#allocation21_spill] sm:$0xff] %v2363_v29  ;;  %v1063_v39 = vmax.f32 %v1061_v15, %v2363_v29  ;;  %v2366_v42 = vpop.f32.mrb[46].mxu0 }
 0x327   : > { %2937 = vst [vmem:[#allocation22_spill] sm:$0xff] %v2366_v42  ;;  %v1027_v46 = vmax.f32 %v1025_v19, %v2366_v42  ;;  %v2369_v50 = vpop.f32.mrb[47].mxu0 }
 0x328   : > { %2938 = vst [vmem:[#allocation23_spill] sm:$0xff] %v2369_v50  ;;  %v1064_v54 = vmax.f32 %v1062_v23, %v2369_v50 }
 0x32c   : > { %v2372_v58 = vpop.f32.mrb[48].mxu0  ;;  %v2966_v13 = vld [vmem:[#allocation20_spill] sm:$0xff] }
 0x32d   : > { %2939 = vst [vmem:[#allocation24_spill] sm:$0xff] %v2372_v58  ;;  %v1028_v62 = vmax.f32 %v1026_v27, %v2372_v58  ;;  %v2375_v2 = vpop.f32.mrb[49].mxu0 }
 0x32e   : > { %2940 = vst [vmem:[#allocation25_spill] sm:$0xff] %v2375_v2  ;;  %v1065_v6 = vmax.f32 %v1063_v39, %v2375_v2  ;;  %v2378_v11 = vpop.f32.mrb[50].mxu0 }
 0x32f   : > { %2941 = vst [vmem:[#allocation26_spill] sm:$0xff] %v2378_v11  ;;  %v1029_v15 = vmax.f32 %v1027_v46, %v2378_v11  ;;  %v2381_v43 = vpop.f32.mrb[51].mxu0 }
 0x330   : > { %2942 = vst [vmem:[#allocation27_spill] sm:$0xff] %v2381_v43  ;;  %v1066_v19 = vmax.f32 %v1064_v54, %v2381_v43 }
 0x334   : > { %v2384_v34 = vpop.f32.mrb[52].mxu0 }
 0x335   : > { %2943 = vst [vmem:[#allocation28_spill] sm:$0xff] %v2384_v34  ;;  %v1030_v23 = vmax.f32 %v1028_v62, %v2384_v34  ;;  %v2387_v7 = vpop.f32.mrb[53].mxu0 }
 0x336   : > { %2944 = vst [vmem:[#allocation29_spill] sm:$0xff] %v2387_v7  ;;  %v1067_v27 = vmax.f32 %v1065_v6, %v2387_v7  ;;  %v2390_v58 = vpop.f32.mrb[54].mxu0 }
 0x337   : > { %2945 = vst [vmem:[#allocation30_spill] sm:$0xff] %v2390_v58  ;;  %v1031_v39 = vmax.f32 %v1029_v15, %v2390_v58  ;;  %v2393_v2 = vpop.f32.mrb[55].mxu0 }
 0x338   : > { %2946 = vst [vmem:[#allocation31_spill] sm:$0xff] %v2393_v2  ;;  %v1068_v46 = vmax.f32 %v1066_v19, %v2393_v2 }
 0x33c   : > { %v2396_v11 = vpop.f32.mrb[56].mxu0 }
 0x33d   : > { %2947 = vst [vmem:[#allocation32_spill] sm:$0xff] %v2396_v11  ;;  %v1032_v54 = vmax.f32 %v1030_v23, %v2396_v11  ;;  %v2399_v43 = vpop.f32.mrb[57].mxu0 }
 0x33e   : > { %2948 = vst [vmem:[#allocation33_spill] sm:$0xff] %v2399_v43  ;;  %v1069_v62 = vmax.f32 %v1067_v27, %v2399_v43  ;;  %v2402_v34 = vpop.f32.mrb[58].mxu0 }
 0x33f   : > { %2949 = vst [vmem:[#allocation34_spill] sm:$0xff] %v2402_v34  ;;  %v1033_v6 = vmax.f32 %v1031_v39, %v2402_v34  ;;  %v2405_v7 = vpop.f32.mrb[59].mxu0 }
 0x340   : > { %2950 = vst [vmem:[#allocation35_spill] sm:$0xff] %v2405_v7  ;;  %v1070_v15 = vmax.f32 %v1068_v46, %v2405_v7 }
 0x344   : > { %v2408_v58 = vpop.f32.mrb[60].mxu0 }
 0x345   : > { %2951 = vst [vmem:[#allocation36_spill] sm:$0xff] %v2408_v58  ;;  %v1034_v19 = vmax.f32 %v1032_v54, %v2408_v58  ;;  %v2411_v2 = vpop.f32.mrb[61].mxu0  ;;  %v1084_v54 = vunpack.c.l.s4 %v2010_v25 }
 0x346   : > { %2952 = vst [vmem:[#allocation37_spill] sm:$0xff] %v2411_v2  ;;  %v1071_v23 = vmax.f32 %v1069_v62, %v2411_v2  ;;  %v2414_v11 = vpop.f32.mrb[62].mxu0 }
 0x347   : > { %2953 = vst [vmem:[#allocation38_spill] sm:$0xff] %v2414_v11  ;;  %v1035_v27 = vmax.f32 %v1033_v6, %v2414_v11  ;;  %v2417_v43 = vpop.f32.mrb[63].mxu0  ;;  %v1085_v2 = vunpack.c.0.s8 %v1084_v54  ;;  %v2960_v54 = vld [vmem:[#allocation14_spill] sm:$0xff] }
 0x348   : > { %v1072_v39 = vmax.f32 %v1070_v15, %v2417_v43 }
 0x349   : > { %v1036_v34 = vmax.f32 %v1034_v19, %v1035_v27  ;;  %v2421_v15 = vsub.s32 %v1085_v2, %v1087_v9 }
 0x34a   : > { %v1073_v50 = vmax.f32 %v1071_v23, %v1072_v39  ;;  %v2968_v39 = vld [vmem:[#allocation22_spill] sm:$0xff] }
 0x34b   : > { %v1037_v42 = vrot.slane %v1036_v34, 4  ;;  %2955 = vst [vmem:[#allocation39_spill] sm:$0xff] %v2421_v15 }
 0x34c   : > { %v1074_v46 = vrot.slane %v1073_v50, 4 }
 0x34d   : > { %v1038_v7 = vmax.f32 %v1036_v34, %v1037_v42  ;;  %v2424_v34 = vld [vmem:[#allocation4] sm:$0x3]  ;;  %v2427_v42 = vsub.s32 0, %v1087_v9 }
 0x34e   : > { %v1075_v29 = vmax.f32 %v1073_v50, %v1074_v46  ;;  %2956 = vst [vmem:[#allocation40_spill] sm:$0xff] %v2424_v34  ;;  %v2967_v46 = vld [vmem:[#allocation21_spill] sm:$0xff] }
 0x34f   : > { %v1039_v58 = vrot.slane %v1038_v7, 2  ;;  %2957 = vst [vmem:[#allocation41_spill] sm:$0xff] %v2427_v42 }
 0x350   : > { %v1076_v21 = vrot.slane %v1075_v29, 2 }
 0x351   : > { %v1040_v17 = vmax.f32 %v1038_v7, %v1039_v58  ;;  %v2429_v7 = vsub.s32 1, %v1087_v9 }
 0x352   : > { %v1077_v62 = vmax.f32 %v1075_v29, %v1076_v21 }
 0x353   : > { %v1041_v6 = vrot.slane %v1040_v17, 1  ;;  %2958 = vst [vmem:[#allocation42_spill] sm:$0xff] %v2429_v7 }
 0x354   : > { %v1078_v11 = vrot.slane %v1077_v62, 1 }
 0x355   : > { %v1042_v4 = vmax.f32 %v1040_v17, %v1041_v6  ;;  %v2962_v6 = vld [vmem:[#allocation16_spill] sm:$0xff] }
 0x356   : > { %v1079_v0 = vmax.f32 %v1077_v62, %v1078_v11  ;;  %v2961_v62 = vld [vmem:[#allocation15_spill] sm:$0xff]  ;;  %v2984_v11 = vld [vmem:[#allocation38_spill] sm:$0xff] }
 0x358   : > { %v1082_v19 = vcombine.low %v1042_v4, %v1079_v0 }
 0x35a   : > { %v1089_v23 = vrot.slane %v1082_v19, %v2421_v15  ;;  %v2963_v19 = vld [vmem:[#allocation17_spill] sm:$0xff] }
 0x35c   : > { %v1096_v25 = vrot.slane %v1089_v23, %v2421_v15  ;;  %v2964_v23 = vld [vmem:[#allocation18_spill] sm:$0xff] }
 0x35d   : > { %v2980_v15 = vld [vmem:[#allocation34_spill] sm:$0xff] }
 0x35e   : > { %v2432_v21 = vmax.f32 %v2424_v34, %v1096_v25  ;;  %v2965_v25 = vld [vmem:[#allocation19_spill] sm:$0xff] }
 0x360   : > { %2959 = vst [vmem:[#allocation43_spill] sm:$0xff] %v2432_v21  ;;  %v2438_v17 = vrot.slane %v2432_v21, %v2427_v42  ;;  %v2442_v0 = vrot.slane %v2432_v21, %v2429_v7  ;;  %1493 = vst.msk [vmem:[#allocation4] sm:$0x3] %vm2234_vm2, %v2432_v21  ;;  %v2978_v42 = vld [vmem:[#allocation32_spill] sm:$0xff]  ;;  %v2981_v21 = vld [vmem:[#allocation35_spill] sm:$0xff] }
 0x362   : > { %v2985_v58 = vsub.f32 %v2219_v30, %v2438_v17  ;;  %v2986_v50 = vsub.f32 %v2221_v31, %v2442_v0  ;;  %v2987_v9 = vsub.f32 %v2223_v32, %v2438_v17  ;;  %v2988_v4 = vsub.f32 %v2225_v33, %v2442_v0 }
 0x363   : > { %v2989_v2 = vsub.f32 %v2227_v35, %v2438_v17  ;;  %v2990_v30 = vsub.f32 %v2231_v37, %v2442_v0  ;;  %v2991_v31 = vsub.f32 %v2240_v40, %v2438_v17  ;;  %v2992_v33 = vsub.f32 %v2248_v45, %v2442_v0 }
 0x364   : > { %v1177_v38 = vmul.f32 1.442695, %v2985_v58  ;;  %v1179_v29 = vmul.f32 1.442695, %v2986_v50  ;;  %v1181_v34 = vmul.f32 1.442695, %v2987_v9  ;;  %v2993_v35 = vsub.f32 %v2252_v47, %v2438_v17 }
 0x365   : > { %v1183_v27 = vmul.f32 1.442695, %v2988_v4  ;;  %v1185_v7 = vmul.f32 1.442695, %v2989_v2  ;;  %v1187_v58 = vmul.f32 1.442695, %v2990_v30  ;;  %v2994_v37 = vsub.f32 %v2255_v49, %v2442_v0 }
 0x366   : > { %1834 = vpow2.f32 %v1177_v38  ;;  %v1189_v32 = vmul.f32 1.442695, %v2991_v31  ;;  %v1191_v4 = vmul.f32 1.442695, %v2992_v33  ;;  %v1193_v38 = vmul.f32 1.442695, %v2993_v35 }
 0x367   : > { %1836 = vpow2.f32 %v1179_v29  ;;  %v1195_v9 = vmul.f32 1.442695, %v2994_v37  ;;  %v2995_v40 = vsub.f32 %v2258_v51, %v2438_v17  ;;  %v2996_v45 = vsub.f32 %v2261_v53, %v2442_v0 }
 0x368   : > { %1838 = vpow2.f32 %v1181_v34  ;;  %v2997_v47 = vsub.f32 %v2264_v55, %v2438_v17  ;;  %v2998_v49 = vsub.f32 %v2267_v57, %v2442_v0  ;;  %v2999_v51 = vsub.f32 %v2270_v59, %v2438_v17 }
 0x369   : > { %1840 = vpow2.f32 %v1183_v27  ;;  %v1197_v34 = vmul.f32 1.442695, %v2995_v40  ;;  %v1199_v29 = vmul.f32 1.442695, %v2996_v45  ;;  %v3000_v53 = vsub.f32 %v2273_v61, %v2442_v0 }
 0x36a   : > { %1842 = vpow2.f32 %v1185_v7  ;;  %v1201_v7 = vmul.f32 1.442695, %v2997_v47  ;;  %v1203_v50 = vmul.f32 1.442695, %v2998_v49  ;;  %v1205_v27 = vmul.f32 1.442695, %v2999_v51 }
 0x36b   : > { %1844 = vpow2.f32 %v1187_v58  ;;  %v1207_v58 = vmul.f32 1.442695, %v3000_v53  ;;  %v3001_v55 = vsub.f32 %v2276_v63, %v2438_v17  ;;  %v3002_v33 = vsub.f32 %v2279_v1, %v2442_v0 }
 0x36c   : > { %1846 = vpow2.f32 %v1189_v32  ;;  %v3003_v35 = vsub.f32 %v2282_v3, %v2438_v17  ;;  %v3004_v37 = vsub.f32 %v2285_v5, %v2442_v0  ;;  %v3005_v40 = vsub.f32 %v2288_v8, %v2438_v17 }
 0x36d   : > { %1848 = vpow2.f32 %v1191_v4  ;;  %v1209_v32 = vmul.f32 1.442695, %v3001_v55  ;;  %v1211_v4 = vmul.f32 1.442695, %v3002_v33  ;;  %v3006_v45 = vsub.f32 %v2291_v10, %v2442_v0 }
 0x36e   : > { %1850 = vpow2.f32 %v1193_v38  ;;  %v1213_v38 = vmul.f32 1.442695, %v3003_v35  ;;  %v3007_v47 = vsub.f32 %v2294_v12, %v2438_v17  ;;  %v3009_v8 = vsub.f32 %v2300_v16, %v2438_v17 }
 0x36f   : > { %1852 = vpow2.f32 %v1195_v9  ;;  %v1215_v9 = vmul.f32 1.442695, %v3004_v37  ;;  %v3010_v10 = vsub.f32 %v2303_v18, %v2442_v0  ;;  %v3011_v53 = vsub.f32 %v2306_v20, %v2438_v17 }
 0x370   : > { %v1835_v2 = vpop.eup %1834  ;;  %1854 = vpow2.f32 %v1197_v34  ;;  %v1217_v34 = vmul.f32 1.442695, %v3005_v40  ;;  %v1221_v5 = vmul.f32 1.442695, %v3007_v47 }
 0x371   : > { %v1837_v30 = vpop.eup %1836  ;;  %1856 = vpow2.f32 %v1199_v29  ;;  %v1219_v29 = vmul.f32 1.442695, %v3006_v45 }
 0x372   : > { %v1839_v31 = vpop.eup %1838  ;;  %1858 = vpow2.f32 %v1201_v7  ;;  %v3008_v7 = vsub.f32 %v2297_v14, %v2442_v0 }
 0x373   : > { %v1841_v57 = vpop.eup %1840  ;;  %1860 = vpow2.f32 %v1203_v50  ;;  %v1225_v50 = vmul.f32 1.442695, %v3009_v8  ;;  %v1307_v12 = vadd.f32 %v1839_v31, %v1835_v2  ;;  %v1416_v33 = vpack.c.bf16 %v1839_v31, %v1835_v2 }
 0x374   : > { %v1843_v59 = vpop.eup %1842  ;;  %1862 = vpow2.f32 %v1205_v27  ;;  %v1223_v49 = vmul.f32 1.442695, %v3008_v7  ;;  %v1227_v27 = vmul.f32 1.442695, %v3010_v10  ;;  %v1417_v14 = vpack.c.bf16 %v1841_v57, %v1837_v30 }
 0x375   : > { %v1845_v61 = vpop.eup %1844  ;;  %1864 = vpow2.f32 %v1207_v58  ;;  %v1229_v58 = vmul.f32 1.442695, %v3011_v53  ;;  %v1308_v16 = vadd.f32 %v1843_v59, %v1307_v12  ;;  %v3015_v7 = vsub.f32 %v2318_v28, %v2438_v17 }
 0x376   : > { %v1847_v63 = vpop.eup %1846  ;;  %1866 = vpow2.f32 %v1209_v32  ;;  %v1344_v32 = vadd.f32 %v1841_v57, %v1837_v30  ;;  %1448 = vmatprep.subr.bf16.mxu1 %v1417_v14  ;;  %v3013_v57 = vsub.f32 %v2312_v24, %v2438_v17  ;;  %v3019_v14 = vsub.f32 %v2330_v48, %v2438_v17 }
 0x377   : > { %v1849_v1 = vpop.eup %1848  ;;  %1868 = vpow2.f32 %v1211_v4  ;;  %v1309_v2 = vadd.f32 %v1847_v63, %v1308_v16  ;;  %1449 = vmatpush1.bf16.msra.mxu1 %v1416_v33  ;;  %v1237_v24 = vmul.f32 1.442695, %v3015_v7 }
 0x378   : > { %v2641_v3 = vpop.eup %1850  ;;  %1870 = vpow2.f32 %v1213_v38  ;;  %v1419_v35 = vpack.c.bf16 %v1849_v1, %v1845_v61  ;;  %v1418_v38 = vpack.c.bf16 %v1847_v63, %v1843_v59  ;;  %v1345_v18 = vadd.f32 %v1845_v61, %v1344_v32 }
 0x379   : > { %v1853_v51 = vpop.eup %1852  ;;  %1872 = vpow2.f32 %v1215_v9  ;;  %v1233_v59 = vmul.f32 1.442695, %v3013_v57 }
 0x37a   : > { %v1855_v55 = vpop.eup %1854  ;;  %1874 = vpow2.f32 %v1217_v34  ;;  %v3012_v34 = vsub.f32 %v2309_v22, %v2442_v0  ;;  %v1346_v45 = vadd.f32 %v1849_v1, %v1345_v18  ;;  %1450 = vmatprep.subr.bf16.mxu1 %v1419_v35  ;;  %v3020_v35 = vsub.f32 %v2333_v52, %v2442_v0 }
 0x37b   : > { %v1857_v4 = vpop.eup %1856  ;;  %1876 = vpow2.f32 %v1219_v29  ;;  %v1420_v20 = vpack.c.bf16 %v1855_v55, %v2641_v3  ;;  %v3014_v29 = vsub.f32 %v2315_v26, %v2442_v0  ;;  %1451 = vmatpush1.bf16.msra.mxu1 %v1418_v38  ;;  %v3021_v18 = vsub.f32 %v2336_v56, %v2438_v17 }
 0x37c   : > { %v2658_v37 = vpop.eup %1858  ;;  %1878 = vpow2.f32 %v1221_v5  ;;  %v1421_v9 = vpack.c.bf16 %v1857_v4, %v1853_v51  ;;  %v1231_v30 = vmul.f32 1.442695, %v3012_v34  ;;  %v1310_v5 = vadd.f32 %v2641_v3, %v1309_v2 }
 0x37d   : > { %v1861_v40 = vpop.eup %1860  ;;  %1880 = vpow2.f32 %v1223_v49  ;;  %v1235_v47 = vmul.f32 1.442695, %v3014_v29  ;;  %v1347_v49 = vadd.f32 %v1853_v51, %v1346_v45  ;;  %v3018_v51 = vsub.f32 %v2327_v44, %v2442_v0 }
 0x37e   : > { %v1863_v31 = vpop.eup %1862  ;;  %1882 = vpow2.f32 %v1225_v50  ;;  %v3016_v50 = vsub.f32 %v2321_v36, %v2442_v0  ;;  %v1311_v10 = vadd.f32 %v1855_v55, %v1310_v5  ;;  %1452 = vmatprep.subr.bf16.mxu1 %v1421_v9  ;;  %v1247_v44 = vmul.f32 1.442695, %v3020_v35 }
 0x37f   : > { %v1865_v61 = vpop.eup %1864  ;;  %1884 = vpow2.f32 %v1227_v27  ;;  %v1422_v22 = vpack.c.bf16 %v1863_v31, %v2658_v37  ;;  %v3017_v27 = vsub.f32 %v2324_v41, %v2438_v17  ;;  %v1243_v12 = vmul.f32 1.442695, %v3018_v51  ;;  %1453 = vmatpush1.bf16.msra.mxu1 %v1420_v20 }
 0x380   : > { %v2672_v63 = vpop.eup %1866  ;;  %1886 = vpow2.f32 %v1229_v58  ;;  %v1423_v1 = vpack.c.bf16 %v1865_v61, %v1861_v40  ;;  %v1239_v26 = vmul.f32 1.442695, %v3016_v50  ;;  %v1348_v58 = vadd.f32 %v1857_v4, %v1347_v49 }
 0x381   : > { %v1869_v8 = vpop.eup %1868  ;;  %1888 = vpow2.f32 %v1231_v30  ;;  %v1241_v53 = vmul.f32 1.442695, %v3017_v27  ;;  %v1312_v32 = vadd.f32 %v2658_v37, %v1311_v10  ;;  %v1245_v41 = vmul.f32 1.442695, %v3019_v14 }
 0x382   : > { %v1871_v3 = vpop.eup %1870  ;;  %1890 = vpow2.f32 %v1233_v59  ;;  %v1349_v33 = vadd.f32 %v1861_v40, %v1348_v58  ;;  %v1249_v9 = vmul.f32 1.442695, %v3021_v18  ;;  %1454 = vmatprep.subr.bf16.mxu1 %v1423_v1  ;;  %v3022_v40 = vsub.f32 %v2339_v60, %v2442_v0 }
 0x383   : > { %v1873_v28 = vpop.eup %1872  ;;  %1892 = vpow2.f32 %v1235_v47  ;;  %v1424_v36 = vpack.c.bf16 %v1871_v3, %v2672_v63  ;;  %v1313_v38 = vadd.f32 %v1863_v31, %v1312_v32  ;;  %v3023_v20 = vsub.f32 %v2960_v54, %v2438_v17  ;;  %1455 = vmatpush1.bf16.msra.mxu1 %v1422_v22 }
 0x384   : > { %v2688_v55 = vpop.eup %1874  ;;  %1894 = vpow2.f32 %v1237_v24  ;;  %v1425_v4 = vpack.c.bf16 %v1873_v28, %v1869_v8  ;;  %v1350_v34 = vadd.f32 %v1865_v61, %v1349_v33  ;;  %v1251_v30 = vmul.f32 1.442695, %v3022_v40 }
 0x385   : > { %v1877_v16 = vpop.eup %1876  ;;  %1896 = vpow2.f32 %v1239_v26  ;;  %v1314_v2 = vadd.f32 %v2672_v63, %v1313_v38  ;;  %v1253_v56 = vmul.f32 1.442695, %v3023_v20  ;;  %v3024_v61 = vsub.f32 %v2961_v62, %v2442_v0 }
 0x386   : > { %v1879_v37 = vpop.eup %1878  ;;  %1898 = vpow2.f32 %v1241_v53  ;;  %v1351_v57 = vadd.f32 %v1869_v8, %v1350_v34  ;;  %v3025_v5 = vsub.f32 %v2962_v6, %v2438_v17  ;;  %1456 = vmatprep.subr.bf16.mxu1 %v1425_v4  ;;  %v3026_v24 = vsub.f32 %v2963_v19, %v2442_v0 }
 0x387   : > { %v1881_v48 = vpop.eup %1880  ;;  %1900 = vpow2.f32 %v1243_v12  ;;  %v1426_v52 = vpack.c.bf16 %v1879_v37, %v2688_v55  ;;  %v1255_v60 = vmul.f32 1.442695, %v3024_v61  ;;  %v1315_v29 = vadd.f32 %v1871_v3, %v1314_v2  ;;  %1457 = vmatpush1.bf16.msra.mxu1 %v1424_v36 }
 0x388   : > { %v2704_v31 = vpop.eup %1882  ;;  %1902 = vpow2.f32 %v1245_v41  ;;  %v1427_v59 = vpack.c.bf16 %v1881_v48, %v1877_v16  ;;  %v1257_v63 = vmul.f32 1.442695, %v3025_v5  ;;  %v1352_v7 = vadd.f32 %v1873_v28, %v1351_v57 }
 0x389   : > { %v1885_v45 = vpop.eup %1884  ;;  %1904 = vpow2.f32 %v1247_v44  ;;  %v1259_v49 = vmul.f32 1.442695, %v3026_v24  ;;  %v1316_v1 = vadd.f32 %v2688_v55, %v1315_v29  ;;  %v3027_v22 = vsub.f32 %v2964_v23, %v2438_v17 }
 0x38a   : > { %v1887_v47 = vpop.eup %1886  ;;  %1906 = vpow2.f32 %v1249_v9  ;;  %v1353_v50 = vadd.f32 %v1877_v16, %v1352_v7  ;;  %v3028_v3 = vsub.f32 %v2965_v25, %v2442_v0  ;;  %v3029_v58 = vsub.f32 %v2966_v13, %v2438_v17  ;;  %1458 = vmatprep.subr.bf16.mxu1 %v1427_v59  ;;  %v3032_v16 = vld [vmem:[#allocation23_spill] sm:$0xff]  ;;  %v3042_v7 = vld [vmem:[#allocation28_spill] sm:$0xff] }
 0x38b   : > { %v1889_v54 = vpop.eup %1888  ;;  %1908 = vpow2.f32 %v1251_v30  ;;  %v1428_v62 = vpack.c.bf16 %v1887_v47, %v2704_v31  ;;  %v1261_v6 = vmul.f32 1.442695, %v3027_v22  ;;  %v1317_v27 = vadd.f32 %v1879_v37, %v1316_v1  ;;  %1459 = vmatpush1.bf16.msra.mxu1 %v1426_v52  ;;  %v3034_v37 = vld [vmem:[#allocation24_spill] sm:$0xff]  ;;  %v3038_v52 = vld [vmem:[#allocation26_spill] sm:$0xff] }
 0x38c   : > { %v2720_v8 = vpop.eup %1890  ;;  %1910 = vpow2.f32 %v1253_v56  ;;  %v1429_v26 = vpack.c.bf16 %v1889_v54, %v1885_v45  ;;  %v1263_v19 = vmul.f32 1.442695, %v3028_v3  ;;  %v1265_v28 = vmul.f32 1.442695, %v3029_v58 }
 0x38d   : > { %v1893_v10 = vpop.eup %1892  ;;  %1912 = vpow2.f32 %v1255_v60  ;;  %v1354_v51 = vadd.f32 %v1881_v48, %v1353_v50  ;;  %v3030_v12 = vsub.f32 %v2967_v46, %v2442_v0  ;;  %v1318_v55 = vadd.f32 %v2704_v31, %v1317_v27  ;;  %v3036_v48 = vld [vmem:[#allocation25_spill] sm:$0xff]  ;;  %v3040_v60 = vld [vmem:[#allocation27_spill] sm:$0xff] }
 0x38e   : > { %v1895_v53 = vpop.eup %1894  ;;  %1914 = vpow2.f32 %v1257_v63  ;;  %v3031_v36 = vsub.f32 %v2968_v39, %v2438_v17  ;;  %v3033_v35 = vsub.f32 %v3032_v16, %v2442_v0  ;;  %v3035_v18 = vsub.f32 %v3034_v37, %v2438_v17  ;;  %1460 = vmatprep.subr.bf16.mxu1 %v1429_v26 }
 0x38f   : > { %v1897_v23 = vpop.eup %1896  ;;  %1916 = vpow2.f32 %v1259_v49  ;;  %v1267_v32 = vmul.f32 1.442695, %v3030_v12  ;;  %v1430_v25 = vpack.c.bf16 %v1895_v53, %v2720_v8  ;;  %v1355_v41 = vadd.f32 %v1885_v45, %v1354_v51  ;;  %1461 = vmatpush1.bf16.msra.mxu1 %v1428_v62  ;;  %v3046_v62 = vld [vmem:[#allocation30_spill] sm:$0xff] }
 0x390   : > { %v2736_v14 = vpop.eup %1898  ;;  %1918 = vpow2.f32 %v1261_v6  ;;  %v1269_v13 = vmul.f32 1.442695, %v3031_v36  ;;  %v1431_v33 = vpack.c.bf16 %v1897_v23, %v1893_v10  ;;  %v1271_v46 = vmul.f32 1.442695, %v3033_v35 }
 0x391   : > { %v1901_v4 = vpop.eup %1900  ;;  %1920 = vpow2.f32 %v1263_v19  ;;  %v1319_v44 = vadd.f32 %v1887_v47, %v1318_v55  ;;  %v1273_v9 = vmul.f32 1.442695, %v3035_v18  ;;  %v1356_v34 = vadd.f32 %v1889_v54, %v1355_v41  ;;  %v3051_v41 = vld [vmem:[#allocation33_spill] sm:$0xff] }
 0x392   : > { %v1903_v38 = vpop.eup %1902  ;;  %1922 = vpow2.f32 %v1265_v28  ;;  %v3037_v40 = vsub.f32 %v3036_v48, %v2442_v0  ;;  %v3039_v56 = vsub.f32 %v3038_v52, %v2438_v17  ;;  %v3041_v29 = vsub.f32 %v3040_v60, %v2442_v0  ;;  %1462 = vmatprep.subr.bf16.mxu1 %v1431_v33  ;;  %v3048_v28 = vld [vmem:[#allocation31_spill] sm:$0xff]  ;;  %v3055_v48 = vld [vmem:[#allocation36_spill] sm:$0xff] }
 0x393   : > { %v1905_v39 = vpop.eup %1904  ;;  %1924 = vpow2.f32 %v1267_v32  ;;  %v1320_v2 = vadd.f32 %v2720_v8, %v1319_v44  ;;  %v1432_v31 = vpack.c.bf16 %v1903_v38, %v2736_v14  ;;  %v1357_v59 = vadd.f32 %v1893_v10, %v1356_v34  ;;  %v3044_v8 = vld [vmem:[#allocation29_spill] sm:$0xff]  ;;  %1463 = vmatpush1.bf16.msra.mxu1 %v1430_v25 }
 0x394   : > { %v1275_v30 = vmul.f32 1.442695, %v3037_v40  ;;  %v2752_v20 = vpop.eup %1906  ;;  %1926 = vpow2.f32 %v1269_v13  ;;  %v1277_v57 = vmul.f32 1.442695, %v3039_v56  ;;  %v1433_v45 = vpack.c.bf16 %v1905_v39, %v1901_v4 }
 0x395   : > { %v1909_v61 = vpop.eup %1908  ;;  %1928 = vpow2.f32 %v1271_v46  ;;  %v1279_v47 = vmul.f32 1.442695, %v3041_v29  ;;  %v1321_v5 = vadd.f32 %v1895_v53, %v1320_v2  ;;  %v3043_v54 = vsub.f32 %v3042_v7, %v2438_v17 }
 0x396   : > { %v1911_v63 = vpop.eup %1910  ;;  %1930 = vpow2.f32 %v1273_v9  ;;  %v1358_v49 = vadd.f32 %v1897_v23, %v1357_v59  ;;  %v3045_v22 = vsub.f32 %v3044_v8, %v2442_v0  ;;  %v3047_v3 = vsub.f32 %v3046_v62, %v2438_v17  ;;  %1464 = vmatprep.subr.bf16.mxu1 %v1433_v45 }
 0x397   : > { %v1281_v24 = vmul.f32 1.442695, %v3043_v54  ;;  %v1913_v1 = vpop.eup %1912  ;;  %1932 = vpow2.f32 %v1275_v30  ;;  %v1322_v50 = vadd.f32 %v2736_v14, %v1321_v5  ;;  %v1434_v26 = vpack.c.bf16 %v1911_v63, %v2752_v20  ;;  %1465 = vmatpush1.bf16.msra.mxu1 %v1432_v31 }
 0x398   : > { %v1283_v6 = vmul.f32 1.442695, %v3045_v22  ;;  %v2768_v10 = vpop.eup %1914  ;;  %1934 = vpow2.f32 %v1277_v57  ;;  %v1285_v19 = vmul.f32 1.442695, %v3047_v3  ;;  %v1359_v27 = vadd.f32 %v1901_v4, %v1358_v49 }
 0x399   : > { %v1435_v53 = vpack.c.bf16 %v1913_v1, %v1909_v61  ;;  %v1917_v58 = vpop.eup %1916  ;;  %1936 = vpow2.f32 %v1279_v47  ;;  %v3049_v51 = vsub.f32 %v3048_v28, %v2442_v0  ;;  %v1323_v12 = vadd.f32 %v1903_v38, %v1322_v50 }
 0x39a   : > { %v1919_v32 = vpop.eup %1918  ;;  %1938 = vpow2.f32 %v1281_v24  ;;  %v3050_v55 = vsub.f32 %v2978_v42, %v2438_v17  ;;  %v1360_v36 = vadd.f32 %v1905_v39, %v1359_v27  ;;  %v3052_v33 = vsub.f32 %v3051_v41, %v2442_v0 }
 0x39b   : > { %v1287_v23 = vmul.f32 1.442695, %v3049_v51  ;;  %v1921_v13 = vpop.eup %1920  ;;  %1940 = vpow2.f32 %v1283_v6  ;;  %v1324_v16 = vadd.f32 %v2752_v20, %v1323_v12  ;;  %v1436_v35 = vpack.c.bf16 %v1919_v32, %v2768_v10  ;;  %1466 = vmatprep.subr.bf16.mxu1 %v1435_v53  ;;  %v3057_v20 = vld [vmem:[#allocation37_spill] sm:$0xff] }
 0x39c   : > { %v1289_v14 = vmul.f32 1.442695, %v3050_v55  ;;  %v1291_v4 = vmul.f32 1.442695, %v3052_v33  ;;  %v1923_v46 = vpop.eup %1922  ;;  %1942 = vpow2.f32 %v1285_v19  ;;  %v3053_v25 = vsub.f32 %v2980_v15, %v2438_v17  ;;  %1467 = vmatpush1.bf16.msra.mxu1 %v1434_v26 }
 0x39d   : > { %v1361_v42 = vadd.f32 %v1909_v61, %v1360_v36  ;;  %v1437_v38 = vpack.c.bf16 %v1921_v13, %v1917_v58  ;;  %v1925_v37 = vpop.eup %1924  ;;  %1944 = vpow2.f32 %v1287_v23  ;;  %v3054_v18 = vsub.f32 %v2981_v21, %v2442_v0 }
 0x39e   : > { %v1293_v44 = vmul.f32 1.442695, %v3053_v25  ;;  %v1325_v34 = vadd.f32 %v1911_v63, %v1324_v16  ;;  %v1927_v39 = vpop.eup %1926  ;;  %1946 = vpow2.f32 %v1289_v14  ;;  %v3056_v40 = vsub.f32 %v3055_v48, %v2438_v17 }
 0x39f   : > { %v1295_v9 = vmul.f32 1.442695, %v3054_v18  ;;  %v1362_v2 = vadd.f32 %v1913_v1, %v1361_v42  ;;  %v1929_v15 = vpop.eup %1928  ;;  %1948 = vpow2.f32 %v1291_v4  ;;  %v3058_v52 = vsub.f32 %v3057_v20, %v2442_v0  ;;  %1468 = vmatprep.subr.bf16.mxu1 %v1437_v38  ;;  %v3064_v20 = vld [vmem:[#allocation12_spill] sm:$0xff] }
 0x3a0   : > { %v1297_v30 = vmul.f32 1.442695, %v3056_v40  ;;  %v1326_v57 = vadd.f32 %v2768_v10, %v1325_v34  ;;  %v1438_v21 = vpack.c.bf16 %v1927_v39, %v1923_v46  ;;  %v1931_v59 = vpop.eup %1930  ;;  %1950 = vpow2.f32 %v1293_v44  ;;  %1469 = vmatpush1.bf16.msra.mxu1 %v1436_v35  ;;  %v3061_v34 = vld [vmem:[#allocation40_spill] sm:$0xff] }
 0x3a1   : > { %v1299_v56 = vmul.f32 1.442695, %v3058_v52  ;;  %v3059_v31 = vsub.f32 %v2984_v11, %v2438_v17  ;;  %v1363_v61 = vadd.f32 %v1917_v58, %v1362_v2  ;;  %v1439_v60 = vpack.c.bf16 %v1929_v15, %v1925_v37  ;;  %v1933_v29 = vpop.eup %1932 }
 0x3a2   : > { %1952 = vpow2.f32 %v1295_v9  ;;  %v3060_v47 = vsub.f32 %v2417_v43, %v2442_v0  ;;  %v1327_v63 = vadd.f32 %v1919_v32, %v1326_v57  ;;  %v1935_v7 = vpop.eup %1934  ;;  %v724_v52 = vpack.c.bf16 %v3064_v20, %v3064_v20 }
 0x3a3   : > { %v1301_v45 = vmul.f32 1.442695, %v3059_v31  ;;  %1954 = vpow2.f32 %v1297_v30  ;;  %v1364_v54 = vadd.f32 %v1921_v13, %v1363_v61  ;;  %v1937_v24 = vpop.eup %1936  ;;  %v1440_v1 = vpack.c.bf16 %v1935_v7, %v1931_v59  ;;  %1470 = vmatprep.subr.bf16.mxu1 %v1439_v60 }
 0x3a4   : > { %v1303_v5 = vmul.f32 1.442695, %v3060_v47  ;;  %1956 = vpow2.f32 %v1299_v56  ;;  %v1328_v49 = vadd.f32 %v1923_v46, %v1327_v63  ;;  %v1939_v17 = vpop.eup %1938  ;;  %v1441_v8 = vpack.c.bf16 %v1937_v24, %v1933_v29  ;;  %1471 = vmatpush1.bf16.msra.mxu1 %v1438_v21 }
 0x3a5   : > { %1958 = vpow2.f32 %v1301_v45  ;;  %v1365_v11 = vadd.f32 %v1925_v37, %v1364_v54  ;;  %v1941_v22 = vpop.eup %1940  ;;  %v3065_v31 = vmov 0   ;;  %v3066_v54 = vld [vmem:[#allocation39_spill] sm:$0xff] }
 0x3a6   : > { %1960 = vpow2.f32 %v1303_v5  ;;  %v1329_v6 = vadd.f32 %v1927_v39, %v1328_v49  ;;  %v1943_v43 = vpop.eup %1942  ;;  %1472 = vmatprep.subr.bf16.mxu1 %v1441_v8  ;;  %v3062_v39 = vld [vmem:[#allocation43_spill] sm:$0xff] }
 0x3a7   : > { %v1366_v0 = vadd.f32 %v1929_v15, %v1365_v11  ;;  %v1945_v50 = vpop.eup %1944  ;;  %v1442_v10 = vpack.c.bf16 %v1943_v43, %v1939_v17  ;;  %v3063_v48 = vsub.f32 %v3061_v34, %v3062_v39 }
 0x3a8   : > { %v1330_v26 = vadd.f32 %v1931_v59, %v1329_v6  ;;  %v1947_v62 = vpop.eup %1946  ;;  %v1443_v19 = vpack.c.bf16 %v1945_v50, %v1941_v22  ;;  %1473 = vmatpush1.bf16.msra.mxu1 %v1440_v1 }
 0x3a9   : > { %v1367_v3 = vadd.f32 %v1933_v29, %v1366_v0  ;;  %v1949_v27 = vpop.eup %1948  ;;  %v1100_v40 = vmul.f32 1.442695, %v3063_v48 }
 0x3aa   : > { %v1331_v53 = vadd.f32 %v1935_v7, %v1330_v26  ;;  %v1951_v58 = vpop.eup %1950  ;;  %1474 = vmatprep.subr.bf16.mxu1 %v1443_v19  ;;  %v1305_v7 = vld [vmem:[#allocation5] sm:$0x3] }
 0x3ab   : > { %v1368_v28 = vadd.f32 %v1937_v24, %v1367_v3  ;;  %v1444_v12 = vpack.c.bf16 %v1951_v58, %v1947_v62  ;;  %1962 = vpow2.f32 %v1100_v40 }
 0x3ac   : > { %v1953_v51 = vpop.eup %1952  ;;  %v1332_v23 = vadd.f32 %v1939_v17, %v1331_v53  ;;  %1475 = vmatpush1.bf16.msra.mxu1 %v1442_v10 }
 0x3ad   : > { %v1955_v32 = vpop.eup %1954  ;;  %v1369_v55 = vadd.f32 %v1941_v22, %v1368_v28  ;;  %v1445_v14 = vpack.c.bf16 %v1953_v51, %v1949_v27  ;;  %v3068_v22 = vld [vmem:[#allocation41_spill] sm:$0xff] }
 0x3ae   : > { %v1957_v36 = vpop.eup %1956  ;;  %v1333_v13 = vadd.f32 %v1943_v43, %v1332_v23  ;;  %v3069_v43 = vld [vmem:[#allocation42_spill] sm:$0xff] }
 0x3af   : > { %v1959_v41 = vpop.eup %1958  ;;  %v1370_v33 = vadd.f32 %v1945_v50, %v1369_v55  ;;  %1476 = vmatprep.subr.bf16.mxu1 %v1445_v14 }
 0x3b0   : > { %v1961_v4 = vpop.eup %1960  ;;  %v1334_v16 = vadd.f32 %v1947_v62, %v1333_v13  ;;  %v1446_v35 = vpack.c.bf16 %v1959_v41, %v1955_v32  ;;  %1477 = vmatpush1.bf16.msra.mxu1 %v1444_v12  ;;  %v1511_v13 = vld [vmem:[#allocation3] sm:$0xff] }
 0x3b1   : > { %v1371_v46 = vadd.f32 %v1949_v27, %v1370_v33  ;;  %v1447_v25 = vpack.c.bf16 %v1961_v4, %v1957_v36 }
 0x3b2   : > { %v1335_v44 = vadd.f32 %v1951_v58, %v1334_v16 }
 0x3b3   : > { %v1372_v42 = vadd.f32 %v1953_v51, %v1371_v46  ;;  %1478 = vmatprep.subr.bf16.mxu1 %v1447_v25 }
 0x3b4   : > { %v1336_v38 = vadd.f32 %v1955_v32, %v1335_v44  ;;  %1479 = vmatpush1.bf16.msra.mxu1 %v1446_v35 }
 0x3b5   : > { %v1373_v37 = vadd.f32 %v1957_v36, %v1372_v42  ;;  %v1963_v63 = vpop.eup %1962  ;;  %v1513_v36 = vld [vmem:[%s2128_s11] sm:$0xf] }
 0x3b6   : > { %v1337_v18 = vadd.f32 %v1959_v41, %v1336_v38  ;;  %v1306_v49 = vmul.f32 %v1963_v63, %v1305_v7  ;;  %v1407_v6 = vrot.slane %v1963_v63, %v3068_v22  ;;  %v1411_v0 = vrot.slane %v1963_v63, %v3069_v43  ;;  %v1512_v41 = vld [vmem:[#allocation3 + $0x8] sm:$0xff] }
 0x3b7   : > { %v1374_v9 = vadd.f32 %v1961_v4, %v1373_v37  ;;  %1481 = vmatmul.mubr.bf16.vlgmr.msra.gmra.mrb[8].mxu1 %v724_v52 }
 0x3b8   : > { %v1338_v30 = vrot.slane %v1337_v18, 4  ;;  %1557 = vmatprep.mubr.bf16.mxu1 %v3065_v31  ;;  %v1414_v26 = vmul.f32 0.0, %v1407_v6  ;;  %v1415_v62 = vmul.f32 0.0, %v1411_v0 }
 0x3b9   : > { %v1375_v2 = vrot.slane %v1374_v9, 4 }
 0x3ba   : > { %v1339_v15 = vadd.f32 %v1338_v30, %v1337_v18 }
 0x3bb   : > { %v1376_v56 = vadd.f32 %v1375_v2, %v1374_v9 }
 0x3bc   : > { %v1340_v57 = vrot.slane %v1339_v15, 2 }
 0x3bd   : > { %v1377_v21 = vrot.slane %v1376_v56, 2 }
 0x3be   : > { %v1341_v59 = vadd.f32 %v1340_v57, %v1339_v15 }
 0x3bf   : > { %v1378_v45 = vadd.f32 %v1377_v21, %v1376_v56 }
 0x3c0   : > { %v1342_v61 = vrot.slane %v1341_v59, 1 }
 0x3c1   : > { %v1379_v60 = vrot.slane %v1378_v45, 1 }
 0x3c2   : > { %v1343_v29 = vadd.f32 %v1342_v61, %v1341_v59 }
 0x3c3   : > { %v1380_v47 = vadd.f32 %v1379_v60, %v1378_v45 }
 0x3c5   : > { %v1383_v5 = vcombine.low %v1343_v29, %v1380_v47 }
 0x3c7   : > { %v1390_v24 = vrot.slane %v1383_v5, %v3066_v54 }
 0x3c9   : > { %v1397_v1 = vrot.slane %v1390_v24, %v3066_v54 }
 0x3cb   : > { %v1399_v17 = vadd.f32 %v1397_v1, %v1306_v49 }
 0x3cd   : > { %1400 = vst.msk [vmem:[#allocation5] sm:$0x3] %vm2234_vm2, %v1399_v17 }
 0x3d4   : > { %v1496_v8 = vld [vmem:[#allocation5] sm:$0x3] }
 0x3d5   : > { %1964 = vrcp.f32 %v1496_v8 }
 0x3df   : > { %v1965_v50 = vpop.eup %1964 }
 0x3e0   : > { %v1502_v19 = vrot.slane %v1965_v50, %v3068_v22  ;;  %v1506_v58 = vrot.slane %v1965_v50, %v3069_v43 }
 0x48a   : > { %v1482_v10 = vpop.f32.mrb[8].mxu1 }
 0x48b   : > { %v1489_v3 = vadd.f32 %v1482_v10, %v1414_v26  ;;  %v1484_v27 = vpop.f32.mrb[9].mxu1 }
 0x48c   : > { %v1490_v53 = vadd.f32 %v1484_v27, %v1415_v62  ;;  %v1486_v28 = vpop.f32.mrb[10].mxu1 }
 0x48d   : > { %v1509_v51 = vmul.f32 %v1502_v19, %v1489_v3  ;;  %v1487_v23 = vpop.f32.mrb[11].mxu1 }
 0x48e   : > { %v1510_v12 = vmul.f32 %v1506_v58, %v1490_v53 }
 0x48f   : > { %v1514_v32 = vpack.c.bf16 %v1509_v51, %v1509_v51 }
 0x490   : > { %v1515_v55 = vpack.c.bf16 %v1510_v12, %v1510_v12 }
 0x491   : > { %v1520_v14 = vsel %vm589_vm0, %v1514_v32, 0 }
 0x492   : > { %1776 = vmatprep.subr.msk.bf16.mxu1 %vm589_vm0, %v1515_v55 }
 0x493   : > { %1526 = vmatpush1.bf16.msra.mxu1 %v1520_v14 }
 0x496   : > { %1777 = vmatmul.mubr.msk.bf16.vlgmr.msra.gmra.mrb[12].mxu1 %vm585_vm1, %v1513_v36 }
 0x567   : > { %1573 = sbr.rel (%p1778_p8) target bundleno = 1398 (0x576), region = 68 }
 0x569   : > { %v1559_v33 = vpop.f32.mrb[12].mxu1 }
 0x56a   : > { %v1566_v4 = vadd.f32 %v1559_v33, %v1511_v13  ;;  %v1561_v16 = vpop.f32.mrb[13].mxu1 }
 0x56b   : > { %v1567_v35 = vadd.f32 %v1561_v16, %v1512_v41  ;;  %v1563_v46 = vpop.f32.mrb[14].mxu1 }
 0x56c   : > { %1568 = vst [vmem:[#allocation3] sm:$0xff] %v1566_v4  ;;  %v1564_v25 = vpop.f32.mrb[15].mxu1 }
 0x56d   : > { %1569 = vst [vmem:[#allocation3 + $0x8] sm:$0xff] %v1567_v35 }
 0x573   : > { %v1574_v44 = vld [vmem:[#allocation3] sm:$0xff] }
 0x574   : > { %v1575_v42 = vld [vmem:[#allocation3 + $0x8] sm:$0xff]  ;;  %1576 = vst [vmem:[%s2138_s1] sm:$0xff] %v1574_v44 }
 0x575   : > { %1577 = vst [vmem:[%s2138_s1 + $0x8] sm:$0xff] %v1575_v42 }
 0x576 PF: > { %s3070_s16 = sld [smem:[#allocation9_spill]]  ;;  %s3071_s13 = sld [smem:[#allocation7_spill]] }
 0x577   : > { %s3072_s14 = sld [smem:[#allocation8_spill]]  ;;  %s3073_s15 = sld [smem:[#allocation10_spill]] }
 0x57c   : > { %s20_s17 = sadd.s32 1, %s3070_s16   ;;  %s3074_s16 = sld [smem:[#allocation11_spill]] }
 0x57d   : > { %p17_p9 = scmp.ge.s32.totalorder %s20_s17, 10  }
 0x57f   :  { %19 = sbr.rel (!%p17_p9) target bundleno = 4 (0x4), region = 122 }

</bundles_post_ra>
